<compile_context>
chip_gen: v7x
topology: tpu7x:2x2x1
jax: 0.10.0
libtpu: 0.0.40
codegen_flags: <defaults>
</compile_context>

<pallas_src>
import functools

import jax
import jax.numpy as jnp
from jax.experimental import pallas as pl
from jax.experimental.pallas import tpu as pltpu


# ---------------------------------------------------------------------------
# fused ConvBlock kernel
#   x_ref   : (1, H+2, (W+2)*C0)  bf16   halo-padded, lane-folded input slab
#   w1_ref  : (9, W*C0, W*C1)     bf16   per-tap block-diagonal folded weights
#   s1/b1   : (1, W*C1)           f32    folded BN scale / (conv-bias + BN) bias
#   w2_ref  : (9, W*C1, W*C2)     bf16
#   s2/b2   : (1, W*C2)           f32
#   o_ref   : (1, H, W*C2)        f32    lane-dense output slab
#   mid_ref : (H+2, (W+2)*C1)     f32    VMEM scratch: padded conv1 activation
# ---------------------------------------------------------------------------
def _conv_block_kernel(x_ref, w1_ref, s1_ref, b1_ref, w2_ref, s2_ref, b2_ref,
                       o_ref, mid_ref, *, H, W, C0, C1, C2):
    def conv3x3(get_tap, w_ref, s_ref, b_ref, cout):
        # 9-tap accumulation (implicit im2col, all VMEM-resident).
        acc = jnp.zeros((H, W * cout), jnp.float32)
        for kh in range(3):
            for kw in range(3):
                acc += jnp.dot(get_tap(kh, kw), w_ref[kh * 3 + kw],
                               preferred_element_type=jnp.float32)
        # fused BatchNorm (inference, folded) + ReLU epilogue in f32
        return jnp.maximum(acc * s_ref[...] + b_ref[...], 0.0)

    # ---- conv1 + BN + ReLU -------------------------------------------------
    y1 = conv3x3(
        lambda kh, kw: x_ref[0, kh:kh + H, kw * C0:(kw + W) * C0],
        w1_ref, s1_ref, b1_ref, C1)

    # stage the halo-padded intermediate in VMEM (never touches HBM)
    mid_ref[...] = jnp.zeros_like(mid_ref)
    mid_ref[1:H + 1, C1:(W + 1) * C1] = y1

    # ---- conv2 + BN + ReLU -------------------------------------------------
    y2 = conv3x3(
        lambda kh, kw: mid_ref[kh:kh + H, kw * C1:(kw + W) * C1]
                       .astype(jnp.bfloat16),
        w2_ref, s2_ref, b2_ref, C2)

    o_ref[...] = y2[None]


# ---------------------------------------------------------------------------
# parameter folding (done once, outside the kernel, in XLA)
# ---------------------------------------------------------------------------
def _fold_weight(w, W):
    """(3,3,Cin,Cout) -> (9, W*Cin, W*Cout) block-diagonal over the W spatial
    columns folded into the lane dimension."""
    cin, cout = w.shape[2], w.shape[3]
    wt = w.reshape(9, cin, cout)
    eye = jnp.eye(W, dtype=w.dtype)
    folded = jnp.einsum("wv,kco->kwcvo", eye, wt)
    return folded.reshape(9, W * cin, W * cout)


def _fold_bn(p, W, eps=1e-5):
    """Inference BN + conv bias -> per-(folded)-column scale & bias."""
    s = p["gamma"] / jnp.sqrt(p["var"] + eps)
    b = (p["b"] - p["mean"]) * s + p["beta"]
    return (jnp.tile(s, W)[None, :].astype(jnp.float32),
            jnp.tile(b, W)[None, :].astype(jnp.float32))


# ---------------------------------------------------------------------------
# forward wrapper (NCHW at the boundary, folded NHWC inside)
# ---------------------------------------------------------------------------
def conv_block_forward(params, x_nchw):
    x = jnp.transpose(x_nchw, (0, 2, 3, 1)).astype(jnp.float32)  # NCHW -> NHWC
    N, H, W, C0 = x.shape
    p1, p2 = params["c1"], params["c2"]
    C1 = p1["w"].shape[-1]
    C2 = p2["w"].shape[-1]

    # halo pad once, cast MXU operand to bf16, fold W into the lane axis
    xp = jnp.pad(x, ((0, 0), (1, 1), (1, 1), (0, 0))).astype(jnp.bfloat16)
    xp = xp.reshape(N, H + 2, (W + 2) * C0)

    w1 = _fold_weight(p1["w"], W).astype(jnp.bfloat16)   # (9, W*C0, W*C1)
    w2 = _fold_weight(p2["w"], W).astype(jnp.bfloat16)   # (9, W*C1, W*C2)
    s1, b1 = _fold_bn(p1, W)
    s2, b2 = _fold_bn(p2, W)

    flops = 2 * N * 9 * H * ((W * C0) * (W * C1) + (W * C1) * (W * C2))
    bytes_accessed = (xp.size * 2 + w1.size * 2 + w2.size * 2
                      + (s1.size + b1.size + s2.size + b2.size) * 4
                      + N * H * W * C2 * 4)

    out = pl.pallas_call(
        functools.partial(_conv_block_kernel, H=H, W=W, C0=C0, C1=C1, C2=C2),
        out_shape=jax.ShapeDtypeStruct((N, H, W * C2), jnp.float32),
        grid=(N,),
        in_specs=[
            pl.BlockSpec((1, H + 2, (W + 2) * C0), lambda n: (n, 0, 0)),
            pl.BlockSpec((9, W * C0, W * C1), lambda n: (0, 0, 0)),
            pl.BlockSpec((1, W * C1), lambda n: (0, 0)),
            pl.BlockSpec((1, W * C1), lambda n: (0, 0)),
            pl.BlockSpec((9, W * C1, W * C2), lambda n: (0, 0, 0)),
            pl.BlockSpec((1, W * C2), lambda n: (0, 0)),
            pl.BlockSpec((1, W * C2), lambda n: (0, 0)),
        ],
        out_specs=pl.BlockSpec((1, H, W * C2), lambda n: (n, 0, 0)),
        scratch_shapes=[pltpu.VMEM((H + 2, (W + 2) * C1), jnp.float32)],
        compiler_params=pltpu.CompilerParams(
            dimension_semantics=("parallel",),
            vmem_limit_bytes=32 * 1024 * 1024,
        ),
        cost_estimate=pl.CostEstimate(flops=flops, transcendentals=0,
                                      bytes_accessed=bytes_accessed),
    )(xp, w1, s1, b1, w2, s2, b2)

    out = out.reshape(N, H, W, C2)
    return jnp.transpose(out, (0, 3, 1, 2))                 # NHWC -> NCHW


# ---------------------------------------------------------------------------
# pure-JAX reference (f32) for a correctness check
# ---------------------------------------------------------------------------
def conv_block_reference(params, x_nchw, eps=1e-5):
    x = jnp.transpose(x_nchw, (0, 2, 3, 1)).astype(jnp.float32)

    def step(h, p):
        y = jax.lax.conv_general_dilated(
            h, p["w"], window_strides=(1, 1), padding="SAME",
            dimension_numbers=("NHWC", "HWIO", "NHWC")) + p["b"]
        s = p["gamma"] / jnp.sqrt(p["var"] + eps)
        y = (y - p["mean"]) * s + p["beta"]
        return jnp.maximum(y, 0.0)

    y = step(step(x, params["c1"]), params["c2"])
    return jnp.transpose(y, (0, 3, 1, 2))


# ---------------------------------------------------------------------------
# deterministic parameter init (shapes follow the PyTorch module __init__)
# ---------------------------------------------------------------------------
def _init_conv_bn(key, cin, cout):
    ks = jax.random.split(key, 6)
    return {
        "w": jax.random.normal(ks[0], (3, 3, cin, cout), jnp.float32)
             * (1.0 / (3.0 * float(cin) ** 0.5)),
        "b": 0.01 * jax.random.normal(ks[1], (cout,), jnp.float32),
        "gamma": 1.0 + 0.1 * jax.random.normal(ks[2], (cout,), jnp.float32),
        "beta": 0.1 * jax.random.normal(ks[3], (cout,), jnp.float32),
        "mean": 0.1 * jax.random.normal(ks[4], (cout,), jnp.float32),
        "var": 1.0 + 0.1 * jnp.abs(jax.random.normal(ks[5], (cout,), jnp.float32)),
    }


def init_conv_block(key, in_channels, out_channels):
    k1, k2 = jax.random.split(key)
    return {"c1": _init_conv_bn(k1, in_channels, out_channels),
            "c2": _init_conv_bn(k2, out_channels, out_channels)}


# ---------------------------------------------------------------------------
if __name__ == "__main__":
    key = jax.random.PRNGKey(0)
    pkey, xkey = jax.random.split(key)

    in_channels, out_channels = 4, 8
    N, H, W = 2, 16, 16

    params = init_conv_block(pkey, in_channels, out_channels)
    x = jax.random.normal(xkey, (N, in_channels, H, W), jnp.float32)

    out = jax.jit(conv_block_forward)(params, x)
    out = jax.block_until_ready(out)

    assert out.shape == (N, out_channels, H, W), out.shape
    assert jnp.all(jnp.isfinite(out))

    ref = conv_block_reference(params, x)
    rel_err = jnp.max(jnp.abs(out - ref)) / (jnp.max(jnp.abs(ref)) + 1e-6)
    assert rel_err < 0.05, float(rel_err)   # bf16 MXU operands, f32 accumulate

    print("KERNEL_OK")
</pallas_src>

<mosaic_0001>
module attributes {stable_mosaic.version = 11 : i64} {
  func.func @_conv_block_kernel(%arg0: i32, %arg1: memref<1x18x72xbf16, #tpu.memory_space<vmem>>, %arg2: memref<9x64x128xbf16, #tpu.memory_space<vmem>>, %arg3: memref<1x128xf32, #tpu.memory_space<vmem>>, %arg4: memref<1x128xf32, #tpu.memory_space<vmem>>, %arg5: memref<9x128x128xbf16, #tpu.memory_space<vmem>>, %arg6: memref<1x128xf32, #tpu.memory_space<vmem>>, %arg7: memref<1x128xf32, #tpu.memory_space<vmem>>, %arg8: memref<1x16x128xf32, #tpu.memory_space<vmem>>, %arg9: memref<18x144xf32, #tpu.memory_space<vmem>>) attributes {dimension_semantics = [#tpu.dimension_semantics<parallel>], iteration_bounds = array<i64: 2>, scalar_prefetch = 0 : i64, scratch_operands = 1 : i64, tpu.core_type = #tpu.core_type<tc>, window_params = [{transform_indices = @transform_0, window_bounds = array<i64: 1, 18, 72>}, {pipeline_mode = #tpu.pipeline_mode<synchronous>, transform_indices = @transform_1, window_bounds = array<i64: 9, 64, 128>}, {pipeline_mode = #tpu.pipeline_mode<synchronous>, transform_indices = @transform_2, window_bounds = array<i64: 1, 128>}, {pipeline_mode = #tpu.pipeline_mode<synchronous>, transform_indices = @transform_3, window_bounds = array<i64: 1, 128>}, {pipeline_mode = #tpu.pipeline_mode<synchronous>, transform_indices = @transform_4, window_bounds = array<i64: 9, 128, 128>}, {pipeline_mode = #tpu.pipeline_mode<synchronous>, transform_indices = @transform_5, window_bounds = array<i64: 1, 128>}, {pipeline_mode = #tpu.pipeline_mode<synchronous>, transform_indices = @transform_6, window_bounds = array<i64: 1, 128>}, {transform_indices = @transform_7, window_bounds = array<i64: 1, 16, 128>}]} {
    %cst = arith.constant 0.000000e+00 : f32
    %0 = vector.broadcast %cst : f32 to vector<16x128xf32>
    %c0 = arith.constant 0 : index
    %c0_0 = arith.constant 0 : index
    %c0_1 = arith.constant 0 : index
    %1 = vector.load %arg1[%c0, %c0_0, %c0_1] : memref<1x18x72xbf16, #tpu.memory_space<vmem>>, vector<1x16x64xbf16>
    %2 = vector.shape_cast %1 : vector<1x16x64xbf16> to vector<16x64xbf16>
    %c0_2 = arith.constant 0 : index
    %c0_3 = arith.constant 0 : index
    %c0_4 = arith.constant 0 : index
    %3 = vector.load %arg2[%c0_2, %c0_3, %c0_4] : memref<9x64x128xbf16, #tpu.memory_space<vmem>>, vector<1x64x128xbf16>
    %4 = vector.shape_cast %3 : vector<1x64x128xbf16> to vector<64x128xbf16>
    %cst_5 = arith.constant dense<0.000000e+00> : vector<16x128xf32>
    %5 = tpu.matmul %2, %4, %cst_5 {dimension_numbers = #tpu.dot_dimension_numbers<[1], [0], [0], [1], [0, 0, 1, 1], [], []>} : vector<16x64xbf16>, vector<64x128xbf16>, vector<16x128xf32> -> vector<16x128xf32>
    %6 = arith.addf %0, %5 : vector<16x128xf32>
    %c0_6 = arith.constant 0 : index
    %c0_7 = arith.constant 0 : index
    %c4 = arith.constant 4 : index
    %7 = vector.load %arg1[%c0_6, %c0_7, %c4] : memref<1x18x72xbf16, #tpu.memory_space<vmem>>, vector<1x16x64xbf16>
    %8 = vector.shape_cast %7 : vector<1x16x64xbf16> to vector<16x64xbf16>
    %c1 = arith.constant 1 : index
    %c0_8 = arith.constant 0 : index
    %c0_9 = arith.constant 0 : index
    %9 = vector.load %arg2[%c1, %c0_8, %c0_9] : memref<9x64x128xbf16, #tpu.memory_space<vmem>>, vector<1x64x128xbf16>
    %10 = vector.shape_cast %9 : vector<1x64x128xbf16> to vector<64x128xbf16>
    %cst_10 = arith.constant dense<0.000000e+00> : vector<16x128xf32>
    %11 = tpu.matmul %8, %10, %cst_10 {dimension_numbers = #tpu.dot_dimension_numbers<[1], [0], [0], [1], [0, 0, 1, 1], [], []>} : vector<16x64xbf16>, vector<64x128xbf16>, vector<16x128xf32> -> vector<16x128xf32>
    %12 = arith.addf %6, %11 : vector<16x128xf32>
    %c0_11 = arith.constant 0 : index
    %c0_12 = arith.constant 0 : index
    %c8 = arith.constant 8 : index
    %13 = vector.load %arg1[%c0_11, %c0_12, %c8] : memref<1x18x72xbf16, #tpu.memory_space<vmem>>, vector<1x16x64xbf16>
    %14 = vector.shape_cast %13 : vector<1x16x64xbf16> to vector<16x64xbf16>
    %c2 = arith.constant 2 : index
    %c0_13 = arith.constant 0 : index
    %c0_14 = arith.constant 0 : index
    %15 = vector.load %arg2[%c2, %c0_13, %c0_14] : memref<9x64x128xbf16, #tpu.memory_space<vmem>>, vector<1x64x128xbf16>
    %16 = vector.shape_cast %15 : vector<1x64x128xbf16> to vector<64x128xbf16>
    %cst_15 = arith.constant dense<0.000000e+00> : vector<16x128xf32>
    %17 = tpu.matmul %14, %16, %cst_15 {dimension_numbers = #tpu.dot_dimension_numbers<[1], [0], [0], [1], [0, 0, 1, 1], [], []>} : vector<16x64xbf16>, vector<64x128xbf16>, vector<16x128xf32> -> vector<16x128xf32>
    %18 = arith.addf %12, %17 : vector<16x128xf32>
    %c0_16 = arith.constant 0 : index
    %c1_17 = arith.constant 1 : index
    %c0_18 = arith.constant 0 : index
    %19 = vector.load %arg1[%c0_16, %c1_17, %c0_18] : memref<1x18x72xbf16, #tpu.memory_space<vmem>>, vector<1x16x64xbf16>
    %20 = vector.shape_cast %19 : vector<1x16x64xbf16> to vector<16x64xbf16>
    %c3 = arith.constant 3 : index
    %c0_19 = arith.constant 0 : index
    %c0_20 = arith.constant 0 : index
    %21 = vector.load %arg2[%c3, %c0_19, %c0_20] : memref<9x64x128xbf16, #tpu.memory_space<vmem>>, vector<1x64x128xbf16>
    %22 = vector.shape_cast %21 : vector<1x64x128xbf16> to vector<64x128xbf16>
    %cst_21 = arith.constant dense<0.000000e+00> : vector<16x128xf32>
    %23 = tpu.matmul %20, %22, %cst_21 {dimension_numbers = #tpu.dot_dimension_numbers<[1], [0], [0], [1], [0, 0, 1, 1], [], []>} : vector<16x64xbf16>, vector<64x128xbf16>, vector<16x128xf32> -> vector<16x128xf32>
    %24 = arith.addf %18, %23 : vector<16x128xf32>
    %c0_22 = arith.constant 0 : index
    %c1_23 = arith.constant 1 : index
    %c4_24 = arith.constant 4 : index
    %25 = vector.load %arg1[%c0_22, %c1_23, %c4_24] : memref<1x18x72xbf16, #tpu.memory_space<vmem>>, vector<1x16x64xbf16>
    %26 = vector.shape_cast %25 : vector<1x16x64xbf16> to vector<16x64xbf16>
    %c4_25 = arith.constant 4 : index
    %c0_26 = arith.constant 0 : index
    %c0_27 = arith.constant 0 : index
    %27 = vector.load %arg2[%c4_25, %c0_26, %c0_27] : memref<9x64x128xbf16, #tpu.memory_space<vmem>>, vector<1x64x128xbf16>
    %28 = vector.shape_cast %27 : vector<1x64x128xbf16> to vector<64x128xbf16>
    %cst_28 = arith.constant dense<0.000000e+00> : vector<16x128xf32>
    %29 = tpu.matmul %26, %28, %cst_28 {dimension_numbers = #tpu.dot_dimension_numbers<[1], [0], [0], [1], [0, 0, 1, 1], [], []>} : vector<16x64xbf16>, vector<64x128xbf16>, vector<16x128xf32> -> vector<16x128xf32>
    %30 = arith.addf %24, %29 : vector<16x128xf32>
    %c0_29 = arith.constant 0 : index
    %c1_30 = arith.constant 1 : index
    %c8_31 = arith.constant 8 : index
    %31 = vector.load %arg1[%c0_29, %c1_30, %c8_31] : memref<1x18x72xbf16, #tpu.memory_space<vmem>>, vector<1x16x64xbf16>
    %32 = vector.shape_cast %31 : vector<1x16x64xbf16> to vector<16x64xbf16>
    %c5 = arith.constant 5 : index
    %c0_32 = arith.constant 0 : index
    %c0_33 = arith.constant 0 : index
    %33 = vector.load %arg2[%c5, %c0_32, %c0_33] : memref<9x64x128xbf16, #tpu.memory_space<vmem>>, vector<1x64x128xbf16>
    %34 = vector.shape_cast %33 : vector<1x64x128xbf16> to vector<64x128xbf16>
    %cst_34 = arith.constant dense<0.000000e+00> : vector<16x128xf32>
    %35 = tpu.matmul %32, %34, %cst_34 {dimension_numbers = #tpu.dot_dimension_numbers<[1], [0], [0], [1], [0, 0, 1, 1], [], []>} : vector<16x64xbf16>, vector<64x128xbf16>, vector<16x128xf32> -> vector<16x128xf32>
    %36 = arith.addf %30, %35 : vector<16x128xf32>
    %c0_35 = arith.constant 0 : index
    %c2_36 = arith.constant 2 : index
    %c0_37 = arith.constant 0 : index
    %37 = vector.load %arg1[%c0_35, %c2_36, %c0_37] : memref<1x18x72xbf16, #tpu.memory_space<vmem>>, vector<1x16x64xbf16>
    %38 = vector.shape_cast %37 : vector<1x16x64xbf16> to vector<16x64xbf16>
    %c6 = arith.constant 6 : index
    %c0_38 = arith.constant 0 : index
    %c0_39 = arith.constant 0 : index
    %39 = vector.load %arg2[%c6, %c0_38, %c0_39] : memref<9x64x128xbf16, #tpu.memory_space<vmem>>, vector<1x64x128xbf16>
    %40 = vector.shape_cast %39 : vector<1x64x128xbf16> to vector<64x128xbf16>
    %cst_40 = arith.constant dense<0.000000e+00> : vector<16x128xf32>
    %41 = tpu.matmul %38, %40, %cst_40 {dimension_numbers = #tpu.dot_dimension_numbers<[1], [0], [0], [1], [0, 0, 1, 1], [], []>} : vector<16x64xbf16>, vector<64x128xbf16>, vector<16x128xf32> -> vector<16x128xf32>
    %42 = arith.addf %36, %41 : vector<16x128xf32>
    %c0_41 = arith.constant 0 : index
    %c2_42 = arith.constant 2 : index
    %c4_43 = arith.constant 4 : index
    %43 = vector.load %arg1[%c0_41, %c2_42, %c4_43] : memref<1x18x72xbf16, #tpu.memory_space<vmem>>, vector<1x16x64xbf16>
    %44 = vector.shape_cast %43 : vector<1x16x64xbf16> to vector<16x64xbf16>
    %c7 = arith.constant 7 : index
    %c0_44 = arith.constant 0 : index
    %c0_45 = arith.constant 0 : index
    %45 = vector.load %arg2[%c7, %c0_44, %c0_45] : memref<9x64x128xbf16, #tpu.memory_space<vmem>>, vector<1x64x128xbf16>
    %46 = vector.shape_cast %45 : vector<1x64x128xbf16> to vector<64x128xbf16>
    %cst_46 = arith.constant dense<0.000000e+00> : vector<16x128xf32>
    %47 = tpu.matmul %44, %46, %cst_46 {dimension_numbers = #tpu.dot_dimension_numbers<[1], [0], [0], [1], [0, 0, 1, 1], [], []>} : vector<16x64xbf16>, vector<64x128xbf16>, vector<16x128xf32> -> vector<16x128xf32>
    %48 = arith.addf %42, %47 : vector<16x128xf32>
    %c0_47 = arith.constant 0 : index
    %c2_48 = arith.constant 2 : index
    %c8_49 = arith.constant 8 : index
    %49 = vector.load %arg1[%c0_47, %c2_48, %c8_49] : memref<1x18x72xbf16, #tpu.memory_space<vmem>>, vector<1x16x64xbf16>
    %50 = vector.shape_cast %49 : vector<1x16x64xbf16> to vector<16x64xbf16>
    %c8_50 = arith.constant 8 : index
    %c0_51 = arith.constant 0 : index
    %c0_52 = arith.constant 0 : index
    %51 = vector.load %arg2[%c8_50, %c0_51, %c0_52] : memref<9x64x128xbf16, #tpu.memory_space<vmem>>, vector<1x64x128xbf16>
    %52 = vector.shape_cast %51 : vector<1x64x128xbf16> to vector<64x128xbf16>
    %cst_53 = arith.constant dense<0.000000e+00> : vector<16x128xf32>
    %53 = tpu.matmul %50, %52, %cst_53 {dimension_numbers = #tpu.dot_dimension_numbers<[1], [0], [0], [1], [0, 0, 1, 1], [], []>} : vector<16x64xbf16>, vector<64x128xbf16>, vector<16x128xf32> -> vector<16x128xf32>
    %54 = arith.addf %48, %53 : vector<16x128xf32>
    %c0_54 = arith.constant 0 : index
    %c0_55 = arith.constant 0 : index
    %55 = vector.load %arg3[%c0_54, %c0_55] : memref<1x128xf32, #tpu.memory_space<vmem>>, vector<1x128xf32>
    %56 = vector.broadcast %55 : vector<1x128xf32> to vector<16x128xf32>
    %57 = arith.mulf %54, %56 : vector<16x128xf32>
    %c0_56 = arith.constant 0 : index
    %c0_57 = arith.constant 0 : index
    %58 = vector.load %arg4[%c0_56, %c0_57] : memref<1x128xf32, #tpu.memory_space<vmem>>, vector<1x128xf32>
    %59 = vector.broadcast %58 : vector<1x128xf32> to vector<16x128xf32>
    %60 = arith.addf %57, %59 : vector<16x128xf32>
    %cst_58 = arith.constant 0.000000e+00 : f32
    %61 = vector.broadcast %cst_58 : f32 to vector<16x128xf32>
    %62 = arith.maximumf %60, %61 : vector<16x128xf32>
    %cst_59 = arith.constant 0.000000e+00 : f32
    %63 = vector.broadcast %cst_59 : f32 to vector<18x144xf32>
    %c0_60 = arith.constant 0 : index
    %c0_61 = arith.constant 0 : index
    %64 = vector.load %arg9[%c0_60, %c0_61] : memref<18x144xf32, #tpu.memory_space<vmem>>, vector<18x144xf32>
    tpu.vector_store %arg9[%c0_60, %c0_61], %63 {strides = array<i32>} : memref<18x144xf32, #tpu.memory_space<vmem>>, vector<18x144xf32>,
    %c1_62 = arith.constant 1 : index
    %c8_63 = arith.constant 8 : index
    %65 = vector.load %arg9[%c1_62, %c8_63] : memref<18x144xf32, #tpu.memory_space<vmem>>, vector<16x128xf32>
    tpu.vector_store %arg9[%c1_62, %c8_63], %62 {strides = array<i32>} : memref<18x144xf32, #tpu.memory_space<vmem>>, vector<16x128xf32>,
    %cst_64 = arith.constant 0.000000e+00 : f32
    %66 = vector.broadcast %cst_64 : f32 to vector<16x128xf32>
    %c0_65 = arith.constant 0 : index
    %c0_66 = arith.constant 0 : index
    %67 = vector.load %arg9[%c0_65, %c0_66] : memref<18x144xf32, #tpu.memory_space<vmem>>, vector<16x128xf32>
    %68 = arith.truncf %67 : vector<16x128xf32> to vector<16x128xbf16>
    %c0_67 = arith.constant 0 : index
    %c0_68 = arith.constant 0 : index
    %c0_69 = arith.constant 0 : index
    %69 = vector.load %arg5[%c0_67, %c0_68, %c0_69] : memref<9x128x128xbf16, #tpu.memory_space<vmem>>, vector<1x128x128xbf16>
    %70 = vector.shape_cast %69 : vector<1x128x128xbf16> to vector<128x128xbf16>
    %cst_70 = arith.constant dense<0.000000e+00> : vector<16x128xf32>
    %71 = tpu.matmul %68, %70, %cst_70 {dimension_numbers = #tpu.dot_dimension_numbers<[1], [0], [0], [1], [0, 0, 1, 1], [], []>} : vector<16x128xbf16>, vector<128x128xbf16>, vector<16x128xf32> -> vector<16x128xf32>
    %72 = arith.addf %66, %71 : vector<16x128xf32>
    %c0_71 = arith.constant 0 : index
    %c8_72 = arith.constant 8 : index
    %73 = vector.load %arg9[%c0_71, %c8_72] : memref<18x144xf32, #tpu.memory_space<vmem>>, vector<16x128xf32>
    %74 = arith.truncf %73 : vector<16x128xf32> to vector<16x128xbf16>
    %c1_73 = arith.constant 1 : index
    %c0_74 = arith.constant 0 : index
    %c0_75 = arith.constant 0 : index
    %75 = vector.load %arg5[%c1_73, %c0_74, %c0_75] : memref<9x128x128xbf16, #tpu.memory_space<vmem>>, vector<1x128x128xbf16>
    %76 = vector.shape_cast %75 : vector<1x128x128xbf16> to vector<128x128xbf16>
    %cst_76 = arith.constant dense<0.000000e+00> : vector<16x128xf32>
    %77 = tpu.matmul %74, %76, %cst_76 {dimension_numbers = #tpu.dot_dimension_numbers<[1], [0], [0], [1], [0, 0, 1, 1], [], []>} : vector<16x128xbf16>, vector<128x128xbf16>, vector<16x128xf32> -> vector<16x128xf32>
    %78 = arith.addf %72, %77 : vector<16x128xf32>
    %c0_77 = arith.constant 0 : index
    %c16 = arith.constant 16 : index
    %79 = vector.load %arg9[%c0_77, %c16] : memref<18x144xf32, #tpu.memory_space<vmem>>, vector<16x128xf32>
    %80 = arith.truncf %79 : vector<16x128xf32> to vector<16x128xbf16>
    %c2_78 = arith.constant 2 : index
    %c0_79 = arith.constant 0 : index
    %c0_80 = arith.constant 0 : index
    %81 = vector.load %arg5[%c2_78, %c0_79, %c0_80] : memref<9x128x128xbf16, #tpu.memory_space<vmem>>, vector<1x128x128xbf16>
    %82 = vector.shape_cast %81 : vector<1x128x128xbf16> to vector<128x128xbf16>
    %cst_81 = arith.constant dense<0.000000e+00> : vector<16x128xf32>
    %83 = tpu.matmul %80, %82, %cst_81 {dimension_numbers = #tpu.dot_dimension_numbers<[1], [0], [0], [1], [0, 0, 1, 1], [], []>} : vector<16x128xbf16>, vector<128x128xbf16>, vector<16x128xf32> -> vector<16x128xf32>
    %84 = arith.addf %78, %83 : vector<16x128xf32>
    %c1_82 = arith.constant 1 : index
    %c0_83 = arith.constant 0 : index
    %85 = vector.load %arg9[%c1_82, %c0_83] : memref<18x144xf32, #tpu.memory_space<vmem>>, vector<16x128xf32>
    %86 = arith.truncf %85 : vector<16x128xf32> to vector<16x128xbf16>
    %c3_84 = arith.constant 3 : index
    %c0_85 = arith.constant 0 : index
    %c0_86 = arith.constant 0 : index
    %87 = vector.load %arg5[%c3_84, %c0_85, %c0_86] : memref<9x128x128xbf16, #tpu.memory_space<vmem>>, vector<1x128x128xbf16>
    %88 = vector.shape_cast %87 : vector<1x128x128xbf16> to vector<128x128xbf16>
    %cst_87 = arith.constant dense<0.000000e+00> : vector<16x128xf32>
    %89 = tpu.matmul %86, %88, %cst_87 {dimension_numbers = #tpu.dot_dimension_numbers<[1], [0], [0], [1], [0, 0, 1, 1], [], []>} : vector<16x128xbf16>, vector<128x128xbf16>, vector<16x128xf32> -> vector<16x128xf32>
    %90 = arith.addf %84, %89 : vector<16x128xf32>
    %c1_88 = arith.constant 1 : index
    %c8_89 = arith.constant 8 : index
    %91 = vector.load %arg9[%c1_88, %c8_89] : memref<18x144xf32, #tpu.memory_space<vmem>>, vector<16x128xf32>
    %92 = arith.truncf %91 : vector<16x128xf32> to vector<16x128xbf16>
    %c4_90 = arith.constant 4 : index
    %c0_91 = arith.constant 0 : index
    %c0_92 = arith.constant 0 : index
    %93 = vector.load %arg5[%c4_90, %c0_91, %c0_92] : memref<9x128x128xbf16, #tpu.memory_space<vmem>>, vector<1x128x128xbf16>
    %94 = vector.shape_cast %93 : vector<1x128x128xbf16> to vector<128x128xbf16>
    %cst_93 = arith.constant dense<0.000000e+00> : vector<16x128xf32>
    %95 = tpu.matmul %92, %94, %cst_93 {dimension_numbers = #tpu.dot_dimension_numbers<[1], [0], [0], [1], [0, 0, 1, 1], [], []>} : vector<16x128xbf16>, vector<128x128xbf16>, vector<16x128xf32> -> vector<16x128xf32>
    %96 = arith.addf %90, %95 : vector<16x128xf32>
    %c1_94 = arith.constant 1 : index
    %c16_95 = arith.constant 16 : index
    %97 = vector.load %arg9[%c1_94, %c16_95] : memref<18x144xf32, #tpu.memory_space<vmem>>, vector<16x128xf32>
    %98 = arith.truncf %97 : vector<16x128xf32> to vector<16x128xbf16>
    %c5_96 = arith.constant 5 : index
    %c0_97 = arith.constant 0 : index
    %c0_98 = arith.constant 0 : index
    %99 = vector.load %arg5[%c5_96, %c0_97, %c0_98] : memref<9x128x128xbf16, #tpu.memory_space<vmem>>, vector<1x128x128xbf16>
    %100 = vector.shape_cast %99 : vector<1x128x128xbf16> to vector<128x128xbf16>
    %cst_99 = arith.constant dense<0.000000e+00> : vector<16x128xf32>
    %101 = tpu.matmul %98, %100, %cst_99 {dimension_numbers = #tpu.dot_dimension_numbers<[1], [0], [0], [1], [0, 0, 1, 1], [], []>} : vector<16x128xbf16>, vector<128x128xbf16>, vector<16x128xf32> -> vector<16x128xf32>
    %102 = arith.addf %96, %101 : vector<16x128xf32>
    %c2_100 = arith.constant 2 : index
    %c0_101 = arith.constant 0 : index
    %103 = vector.load %arg9[%c2_100, %c0_101] : memref<18x144xf32, #tpu.memory_space<vmem>>, vector<16x128xf32>
    %104 = arith.truncf %103 : vector<16x128xf32> to vector<16x128xbf16>
    %c6_102 = arith.constant 6 : index
    %c0_103 = arith.constant 0 : index
    %c0_104 = arith.constant 0 : index
    %105 = vector.load %arg5[%c6_102, %c0_103, %c0_104] : memref<9x128x128xbf16, #tpu.memory_space<vmem>>, vector<1x128x128xbf16>
    %106 = vector.shape_cast %105 : vector<1x128x128xbf16> to vector<128x128xbf16>
    %cst_105 = arith.constant dense<0.000000e+00> : vector<16x128xf32>
    %107 = tpu.matmul %104, %106, %cst_105 {dimension_numbers = #tpu.dot_dimension_numbers<[1], [0], [0], [1], [0, 0, 1, 1], [], []>} : vector<16x128xbf16>, vector<128x128xbf16>, vector<16x128xf32> -> vector<16x128xf32>
    %108 = arith.addf %102, %107 : vector<16x128xf32>
    %c2_106 = arith.constant 2 : index
    %c8_107 = arith.constant 8 : index
    %109 = vector.load %arg9[%c2_106, %c8_107] : memref<18x144xf32, #tpu.memory_space<vmem>>, vector<16x128xf32>
    %110 = arith.truncf %109 : vector<16x128xf32> to vector<16x128xbf16>
    %c7_108 = arith.constant 7 : index
    %c0_109 = arith.constant 0 : index
    %c0_110 = arith.constant 0 : index
    %111 = vector.load %arg5[%c7_108, %c0_109, %c0_110] : memref<9x128x128xbf16, #tpu.memory_space<vmem>>, vector<1x128x128xbf16>
    %112 = vector.shape_cast %111 : vector<1x128x128xbf16> to vector<128x128xbf16>
    %cst_111 = arith.constant dense<0.000000e+00> : vector<16x128xf32>
    %113 = tpu.matmul %110, %112, %cst_111 {dimension_numbers = #tpu.dot_dimension_numbers<[1], [0], [0], [1], [0, 0, 1, 1], [], []>} : vector<16x128xbf16>, vector<128x128xbf16>, vector<16x128xf32> -> vector<16x128xf32>
    %114 = arith.addf %108, %113 : vector<16x128xf32>
    %c2_112 = arith.constant 2 : index
    %c16_113 = arith.constant 16 : index
    %115 = vector.load %arg9[%c2_112, %c16_113] : memref<18x144xf32, #tpu.memory_space<vmem>>, vector<16x128xf32>
    %116 = arith.truncf %115 : vector<16x128xf32> to vector<16x128xbf16>
    %c8_114 = arith.constant 8 : index
    %c0_115 = arith.constant 0 : index
    %c0_116 = arith.constant 0 : index
    %117 = vector.load %arg5[%c8_114, %c0_115, %c0_116] : memref<9x128x128xbf16, #tpu.memory_space<vmem>>, vector<1x128x128xbf16>
    %118 = vector.shape_cast %117 : vector<1x128x128xbf16> to vector<128x128xbf16>
    %cst_117 = arith.constant dense<0.000000e+00> : vector<16x128xf32>
    %119 = tpu.matmul %116, %118, %cst_117 {dimension_numbers = #tpu.dot_dimension_numbers<[1], [0], [0], [1], [0, 0, 1, 1], [], []>} : vector<16x128xbf16>, vector<128x128xbf16>, vector<16x128xf32> -> vector<16x128xf32>
    %120 = arith.addf %114, %119 : vector<16x128xf32>
    %c0_118 = arith.constant 0 : index
    %c0_119 = arith.constant 0 : index
    %121 = vector.load %arg6[%c0_118, %c0_119] : memref<1x128xf32, #tpu.memory_space<vmem>>, vector<1x128xf32>
    %122 = vector.broadcast %121 : vector<1x128xf32> to vector<16x128xf32>
    %123 = arith.mulf %120, %122 : vector<16x128xf32>
    %c0_120 = arith.constant 0 : index
    %c0_121 = arith.constant 0 : index
    %124 = vector.load %arg7[%c0_120, %c0_121] : memref<1x128xf32, #tpu.memory_space<vmem>>, vector<1x128xf32>
    %125 = vector.broadcast %124 : vector<1x128xf32> to vector<16x128xf32>
    %126 = arith.addf %123, %125 : vector<16x128xf32>
    %cst_122 = arith.constant 0.000000e+00 : f32
    %127 = vector.broadcast %cst_122 : f32 to vector<16x128xf32>
    %128 = arith.maximumf %126, %127 : vector<16x128xf32>
    %129 = vector.shape_cast %128 : vector<16x128xf32> to vector<1x16x128xf32>
    %c0_123 = arith.constant 0 : index
    %c0_124 = arith.constant 0 : index
    %c0_125 = arith.constant 0 : index
    %130 = vector.load %arg8[%c0_123, %c0_124, %c0_125] : memref<1x16x128xf32, #tpu.memory_space<vmem>>, vector<1x16x128xf32>
    tpu.vector_store %arg8[%c0_123, %c0_124, %c0_125], %129 {strides = array<i32>} : memref<1x16x128xf32, #tpu.memory_space<vmem>>, vector<1x16x128xf32>,
    return
  }
  func.func @transform_0(%arg0: i32) -> (i32, i32, i32) {
    %c0_i32 = arith.constant 0 : i32
    %c0_i32_0 = arith.constant 0 : i32
    %c0_i32_1 = arith.constant 0 : i32
    return %arg0, %c0_i32, %c0_i32_0 : i32, i32, i32
  }
  func.func @transform_1(%arg0: i32) -> (i32, i32, i32) {
    %c0_i32 = arith.constant 0 : i32
    %c0_i32_0 = arith.constant 0 : i32
    %c0_i32_1 = arith.constant 0 : i32
    %c0_i32_2 = arith.constant 0 : i32
    return %c0_i32, %c0_i32_0, %c0_i32_1 : i32, i32, i32
  }
  func.func @transform_2(%arg0: i32) -> (i32, i32) {
    %c0_i32 = arith.constant 0 : i32
    %c0_i32_0 = arith.constant 0 : i32
    %c0_i32_1 = arith.constant 0 : i32
    return %c0_i32, %c0_i32_0 : i32, i32
  }
  func.func @transform_3(%arg0: i32) -> (i32, i32) {
    %c0_i32 = arith.constant 0 : i32
    %c0_i32_0 = arith.constant 0 : i32
    %c0_i32_1 = arith.constant 0 : i32
    return %c0_i32, %c0_i32_0 : i32, i32
  }
  func.func @transform_4(%arg0: i32) -> (i32, i32, i32) {
    %c0_i32 = arith.constant 0 : i32
    %c0_i32_0 = arith.constant 0 : i32
    %c0_i32_1 = arith.constant 0 : i32
    %c0_i32_2 = arith.constant 0 : i32
    return %c0_i32, %c0_i32_0, %c0_i32_1 : i32, i32, i32
  }
  func.func @transform_5(%arg0: i32) -> (i32, i32) {
    %c0_i32 = arith.constant 0 : i32
    %c0_i32_0 = arith.constant 0 : i32
    %c0_i32_1 = arith.constant 0 : i32
    return %c0_i32, %c0_i32_0 : i32, i32
  }
  func.func @transform_6(%arg0: i32) -> (i32, i32) {
    %c0_i32 = arith.constant 0 : i32
    %c0_i32_0 = arith.constant 0 : i32
    %c0_i32_1 = arith.constant 0 : i32
    return %c0_i32, %c0_i32_0 : i32, i32
  }
  func.func @transform_7(%arg0: i32) -> (i32, i32, i32) {
    %c0_i32 = arith.constant 0 : i32
    %c0_i32_0 = arith.constant 0 : i32
    %c0_i32_1 = arith.constant 0 : i32
    return %arg0, %c0_i32, %c0_i32_0 : i32, i32, i32
  }
}

</mosaic_0001>

<bundles_post_ra>
// kernel: tile.23
= control target key start
LH: loop header
LB: loop body
LE: loop exit
PB: predicated region body
PF: predicated region fallthrough
CT: control target
= control target key end

     0   :  { %s28_s0 = inlined_call_operand.vmem [shape: f32[8], index: 0, kind: input, shape index: {}]   ;;  %s29_s1 = inlined_call_operand.vmem [shape: f32[16,8], index: 1, kind: output, shape index: {}]  }
   0x1   :  { %v4_v0 = vld [vmem:[%s28_s0] ss:$0 sm:$0xff] }
   0x2   :  { %5 = vst [vmem:[%s29_s1] sm:$0xff] %v4_v0  ;;  %8 = vst [vmem:[%s29_s1 + $0x8] sm:$0xff] %v4_v0 }

// kernel: tile.24
= control target key start
LH: loop header
LB: loop body
LE: loop exit
PB: predicated region body
PF: predicated region fallthrough
CT: control target
= control target key end

     0   :  { %s131_s10 = smov 120   ;;  %s132_s11 = smov 104   ;;  %vm3_vm0 = vcmask 64512   ;;  %vm9_vm1 = vcmask 1048512   ;;  %vm15_vm2 = vcmask 982912   ;;  %vm21_vm3 = vcmask 917312   ;;  %s207_s0 = inlined_call_operand.vmem [shape: f32[16,8], index: 0, kind: input, shape index: {}]   ;;  %s208_s1 = inlined_call_operand.vmem [shape: f32[1,128], index: 1, kind: output, shape index: {}]  }
   0x1   :  { %v101_v0 = vld [vmem:[%s207_s0 + $0xf] sm:$0x1]   ;;  %v103_v1 = vld [vmem:[%s207_s0 + $0xd] sm:$0x1]   ;;  %v102_v2 = vld [vmem:[%s207_s0 + $0xe] sm:$0x1]  }
   0x2   :  { %7 = vrot.lane.b32.xlu0 %v101_v0, %s131_s10  ;;  %19 = vrot.lane.b32.xlu1 %v103_v1, %s132_s11  ;;  %v104_v3 = vld [vmem:[%s207_s0 + $0xc] sm:$0x1]   ;;  %s133_s16 = smov 112   ;;  %s134_s17 = smov 96   ;;  %v105_v4 = vld [vmem:[%s207_s0 + $0xb] sm:$0x1]  }
   0x3   :  { %v106_v5 = vld [vmem:[%s207_s0 + $0xa] sm:$0x1]   ;;  %v2_v6 = vld [vmem:[%s207_s0] sm:$0x1]   ;;  %s135_s24 = smov 88   ;;  %s136_s25 = smov 80  }
   0x4   :  { %4 = vst.msk [vmem:[#allocation0] sm:$0x1] %vm3_vm0, %v2_v6   ;;  %v107_v7 = vld [vmem:[%s207_s0 + $0x9] sm:$0x1]   ;;  %v108_v8 = vld [vmem:[%s207_s0 + $0x8] sm:$0x1]  }
   0x5   :  { %s137_s30 = smov 72   ;;  %s138_s2 = smov 64   ;;  %v109_v9 = vld [vmem:[%s207_s0 + $0x7] sm:$0x1]   ;;  %v110_v10 = vld [vmem:[%s207_s0 + $0x6] sm:$0x1]  }
   0x6   :  { %13 = vrot.lane.b32.xlu0 %v102_v2, %s133_s16  ;;  %25 = vrot.lane.b32.xlu1 %v104_v3, %s134_s17  ;;  %s139_s7 = smov 56   ;;  %s140_s8 = smov 48   ;;  %v111_v11 = vld [vmem:[%s207_s0 + $0x5] sm:$0x1]   ;;  %v112_v12 = vld [vmem:[%s207_s0 + $0x4] sm:$0x1]  }
   0x7   :  { %s141_s13 = smov 40   ;;  %s142_s14 = smov 32   ;;  %v113_v13 = vld [vmem:[%s207_s0 + $0x3] sm:$0x1]   ;;  %v114_v14 = vld [vmem:[%s207_s0 + $0x2] sm:$0x1]  }
   0x8   :  { %s143_s19 = smov 24   ;;  %s144_s20 = smov 16   ;;  %v115_v15 = vld [vmem:[%s207_s0 + $0x1] sm:$0x1]   ;;  %vm27_vm4 = vcmask 851712   ;;  %vm33_vm5 = vcmask 786112  }
   0x9   :  { %s145_s0 = smov 8   ;;  %vm39_vm6 = vcmask 720512   ;;  %vm45_vm7 = vcmask 654912   ;;  %vm51_vm8 = vcmask 589312   ;;  %vm57_vm9 = vcmask 523712  }
   0xa   :  { %31 = vrot.lane.b32.xlu0 %v105_v4, %s135_s24  ;;  %37 = vrot.lane.b32.xlu1 %v106_v5, %s136_s25  ;;  %vm63_vm10 = vcmask 458112   ;;  %vm69_vm11 = vcmask 392512   ;;  %vm75_vm12 = vcmask 326912   ;;  %vm81_vm13 = vcmask 261312  }
   0xb   :  { %vm87_vm14 = vcmask 195712   ;;  %vm93_vm15 = vcmask 130112  }
   0xe   :  { %43 = vrot.lane.b32.xlu0 %v107_v7, %s137_s30  ;;  %49 = vrot.lane.b32.xlu1 %v108_v8, %s138_s2 }
  0x12   :  { %55 = vrot.lane.b32.xlu0 %v109_v9, %s139_s7  ;;  %61 = vrot.lane.b32.xlu1 %v110_v10, %s140_s8 }
  0x16   :  { %67 = vrot.lane.b32.xlu0 %v111_v11, %s141_s13  ;;  %73 = vrot.lane.b32.xlu1 %v112_v12, %s142_s14 }
  0x1a   :  { %79 = vrot.lane.b32.xlu0 %v113_v13, %s143_s19  ;;  %85 = vrot.lane.b32.xlu1 %v114_v14, %s144_s20 }
  0x1e   :  { %91 = vrot.lane.b32.xlu0 %v115_v15, %s145_s0 }
  0x74   :  { %v8_v16 = vpop.permute.xlu0 %7   ;;  %v20_v17 = vpop.permute.xlu1 %19  }
  0x75   :  { %10 = vst.msk [vmem:[#allocation0] sm:$0x1] %vm9_vm1, %v8_v16  }
  0x78   :  { %v14_v18 = vpop.permute.xlu0 %13   ;;  %v26_v19 = vpop.permute.xlu1 %25  }
  0x79   :  { %16 = vst.msk [vmem:[#allocation0] sm:$0x1] %vm15_vm2, %v14_v18  }
  0x7a   :  { %22 = vst.msk [vmem:[#allocation0] sm:$0x1] %vm21_vm3, %v20_v17  }
  0x7b   :  { %28 = vst.msk [vmem:[#allocation0] sm:$0x1] %vm27_vm4, %v26_v19  }
  0x7c   :  { %v32_v20 = vpop.permute.xlu0 %31   ;;  %v38_v21 = vpop.permute.xlu1 %37  }
  0x7d   :  { %34 = vst.msk [vmem:[#allocation0] sm:$0x1] %vm33_vm5, %v32_v20  }
  0x7e   :  { %40 = vst.msk [vmem:[#allocation0] sm:$0x1] %vm39_vm6, %v38_v21  }
  0x80   :  { %v44_v22 = vpop.permute.xlu0 %43   ;;  %v50_v23 = vpop.permute.xlu1 %49  }
  0x81   :  { %46 = vst.msk [vmem:[#allocation0] sm:$0x1] %vm45_vm7, %v44_v22  }
  0x82   :  { %52 = vst.msk [vmem:[#allocation0] sm:$0x1] %vm51_vm8, %v50_v23  }
  0x84   :  { %v56_v24 = vpop.permute.xlu0 %55   ;;  %v62_v25 = vpop.permute.xlu1 %61  }
  0x85   :  { %58 = vst.msk [vmem:[#allocation0] sm:$0x1] %vm57_vm9, %v56_v24  }
  0x86   :  { %64 = vst.msk [vmem:[#allocation0] sm:$0x1] %vm63_vm10, %v62_v25  }
  0x88   :  { %v68_v26 = vpop.permute.xlu0 %67   ;;  %v74_v27 = vpop.permute.xlu1 %73  }
  0x89   :  { %70 = vst.msk [vmem:[#allocation0] sm:$0x1] %vm69_vm11, %v68_v26  }
  0x8a   :  { %76 = vst.msk [vmem:[#allocation0] sm:$0x1] %vm75_vm12, %v74_v27  }
  0x8c   :  { %v80_v28 = vpop.permute.xlu0 %79   ;;  %v86_v29 = vpop.permute.xlu1 %85  }
  0x8d   :  { %82 = vst.msk [vmem:[#allocation0] sm:$0x1] %vm81_vm13, %v80_v28  }
  0x8e   :  { %88 = vst.msk [vmem:[#allocation0] sm:$0x1] %vm87_vm14, %v86_v29  }
  0x90   :  { %v92_v30 = vpop.permute.xlu0 %91  }
  0x91   :  { %94 = vst.msk [vmem:[#allocation0] sm:$0x1] %vm93_vm15, %v92_v30  }
  0x98   :  { %v98_v31 = vld [vmem:[#allocation0] sm:$0x1] }
  0x99   :  { %100 = vst [vmem:[%s208_s1] sm:$0x1] %v98_v31 }

// kernel: conv_block_forward.1
= control target key start
LH: loop header
LB: loop body
LE: loop exit
PB: predicated region body
PF: predicated region fallthrough
CT: control target
= control target key end

     0   :  { %s3248_s24 = smov 0   ;;  %s3819_s0 = inlined_call_operand.vmem [shape: bf16[2,18,72], index: 0, kind: input, shape index: {}]   ;;  %s3820_s1 = inlined_call_operand.vmem [shape: bf16[9,64,128], index: 1, kind: input, shape index: {}]   ;;  %s3821_s2 = inlined_call_operand.vmem [shape: f32[1,128], index: 2, kind: input, shape index: {}]   ;;  %s3822_s3 = inlined_call_operand.vmem [shape: f32[1,128], index: 3, kind: input, shape index: {}]   ;;  %s3823_s4 = inlined_call_operand.vmem [shape: bf16[9,128,128], index: 4, kind: input, shape index: {}]   ;;  %s3824_s5 = inlined_call_operand.vmem [shape: f32[1,128], index: 5, kind: input, shape index: {}]   ;;  %s3825_s6 = inlined_call_operand.vmem [shape: f32[1,128], index: 6, kind: input, shape index: {}]   ;;  %s3826_s7 = inlined_call_operand.vmem [shape: f32[2,16,128], index: 7, kind: output, shape index: {}]  }
   0x1 LB: > { %s2263_s25 = sadd.s32 4294967295, %s3200_s24   ;;  %p2267_p0 = scmp.ge.s32.totalorder %s3200_s24, 1  ;;  %s3200_s24 = sphi %s3248_s24, %s17_s24  }
   0x2   : > { %p237_p1 = scmp.lt.s32.totalorder %s3200_s24, 3 }
   0x4   : > { %p238_p2 = pnand %p2267_p0, %p237_p1 }
   0x5   : > { %p269_p3 = scmp.lt.s32.totalorder (!%p238_p2), %s2263_s25, 1  ;;  %v3085_v0 = vld [vmem:[%s3820_s1 + $0x20] sm:$0xff] (!%p238_p2)   ;;  %v3202_v1 = vmov (!%p238_p2), 0.0   ;;  %v3086_v2 = vld [vmem:[%s3820_s1 + $0x28] sm:$0xff] (!%p238_p2)   ;;  %vm3203_vm0 = vmmov (!%p238_p2), 0   ;;  %v3087_v3 = vld [vmem:[%s3820_s1 + $0x30] sm:$0xff] (!%p238_p2)  }
   0x6   : > { %241 = sbr.rel (%p238_p2) target bundleno = 1141 (0x475), region = 48  ;;  %2717 = vmatprep.subr.bf16.mxu0 (!%p238_p2), %v3202_v1  ;;  %1058 = vst [vmem:[#allocation2] sm:$0xff] (!%p238_p2), %v3202_v1  ;;  %1061 = vst [vmem:[#allocation2 + $0x10] sm:$0xff] (!%p238_p2), %v3202_v1  ;;  %2865 = vmatprep.subr.bf16.mxu1 (!%p238_p2), %v3202_v1  ;;  %v3088_v7 = vld [vmem:[%s3820_s1 + $0x38] sm:$0xff] (!%p238_p2)   ;;  %s3204_s15 = smov (!%p238_p2), 124   ;;  %vm802_vm1 = vcmask (!%p238_p2), 1046528  }
   0x7   : > { %1063 = vst [vmem:[#allocation2 + $0x20] sm:$0x3] (!%p238_p2), %v3202_v1  ;;  %2718 = vmatpush3.bf16.msra.mxu0 (!%p238_p2), %v3085_v0  ;;  %2725 = vmatprep.mubr.msk.bf16.mxu0 (!%p238_p2), %vm3203_vm0, %v3202_v1  ;;  %s3205_s16 = smov (!%p238_p2), 120   ;;  %vm544_vm2 = vsmask.f32 (!%p238_p2), 7424  ;;  %vm330_vm3 = vcmask (!%p238_p2), 523264  }
   0x8   : > { %2719 = vmatprep.subr.bf16.mxu0 (!%p238_p2), %v3202_v1  ;;  %2881 = vmatprep.mubr.msk.bf16.mxu1 (!%p238_p2), %vm3203_vm0, %v3202_v1  ;;  %v3090_v22 = vld [vmem:[%s3820_s1] sm:$0xff] (!%p238_p2)   ;;  %v3091_v24 = vld [vmem:[%s3820_s1 + $0x8] sm:$0xff] (!%p238_p2)   ;;  %v3092_v25 = vld [vmem:[%s3820_s1 + $0x10] sm:$0xff] (!%p238_p2)   ;;  %vm1059_vm4 = vcmask (!%p238_p2), 130048   ;;  %vm1064_vm5 = vcmask (!%p238_p2), 123904   ;;  %vm1068_vm6 = vcmask (!%p238_p2), 1040384  }
   0x9   : > { %v3093_v26 = vld [vmem:[%s3820_s1 + $0x18] sm:$0xff] (!%p238_p2)   ;;  %v3094_v27 = vld [vmem:[%s3820_s1 + $0x40] sm:$0xff] (!%p238_p2)   ;;  %v3095_v28 = vld [vmem:[%s3820_s1 + $0x48] sm:$0xff] (!%p238_p2)   ;;  %1060 = vst.msk [vmem:[#allocation2 + $0x8] sm:$0xff] (!%p238_p2), %vm1059_vm4, %v3202_v1  ;;  %s3206_s27 = smov (!%p238_p2), 8   ;;  %vm1081_vm7 = vcmask (!%p238_p2), 1047617  }
   0xa   : > { %v3096_v29 = vld [vmem:[%s3820_s1 + $0x50] sm:$0xff] (!%p238_p2)   ;;  %v3097_v30 = vld [vmem:[%s3820_s1 + $0x58] sm:$0xff] (!%p238_p2)   ;;  %v3098_v32 = vld [vmem:[%s3820_s1 + $0x60] sm:$0xff] (!%p238_p2)   ;;  %1062 = vst.msk [vmem:[#allocation2 + $0x18] sm:$0xff] (!%p238_p2), %vm1059_vm4, %v3202_v1  ;;  %vm1083_vm8 = vcmask (!%p238_p2), 64513   ;;  %vm1085_vm9 = vcmask (!%p238_p2), 1047616  }
   0xb   : > { %2720 = vmatpush3.bf16.msra.mxu0 (!%p238_p2), %v3086_v2  ;;  %v3099_v33 = vld [vmem:[%s3820_s1 + $0x68] sm:$0xff] (!%p238_p2)   ;;  %v3100_v34 = vld [vmem:[%s3820_s1 + $0x70] sm:$0xff] (!%p238_p2)   ;;  %v3101_v35 = vld [vmem:[%s3820_s1 + $0x78] sm:$0xff] (!%p238_p2)   ;;  %1065 = vst.msk [vmem:[#allocation2 + $0x28] sm:$0x3] (!%p238_p2), %vm1064_vm5, %v3202_v1  ;;  %vm1087_vm10 = vcmask (!%p238_p2), 64512  }
   0xc   : > { %2721 = vmatprep.subr.bf16.mxu0 (!%p238_p2), %v3202_v1  ;;  %v3102_v36 = vld [vmem:[%s3820_s1 + $0x80] sm:$0xff] (!%p238_p2)   ;;  %v3103_v37 = vld [vmem:[%s3820_s1 + $0x88] sm:$0xff] (!%p238_p2)   ;;  %v3104_v38 = vld [vmem:[%s3820_s1 + $0x90] sm:$0xff] (!%p238_p2)   ;;  %vm1089_vm11 = vcmask (!%p238_p2), 1040448   ;;  %vm1091_vm12 = vcmask (!%p238_p2), 57344   ;;  %s3207_s18 = smov (!%p238_p2), 112  }
   0xd   : > { %s3828_s25 = smov (!%p269_p3, %s2263_s25), 1  ;;  %v3105_v39 = vld [vmem:[%s3820_s1 + $0x98] sm:$0xff]   ;;  %v3106_v41 = vld [vmem:[%s3820_s1 + $0xa0] sm:$0xff]   ;;  %v3107_v42 = vld [vmem:[%s3820_s1 + $0xa8] sm:$0xff]   ;;  %vm1340_vm13 = vcmask 916480   ;;  %vm1138_vm14 = vcmask 982016  }
   0xe   : > { %s3067_s30 = smul.u32 12, %s3828_s25  ;;  %v3108_v43 = vld [vmem:[%s3820_s1 + $0xb0] sm:$0xff]   ;;  %v3109_v44 = vld [vmem:[%s3820_s1 + $0xb8] sm:$0xff]   ;;  %v3110_v46 = vld [vmem:[%s3820_s1 + $0xc0] sm:$0xff]   ;;  %s2590_s8 = sshll.u32 %s3828_s25, 4 }
   0xf   : > { %2722 = vmatpush3.bf16.msra.mxu0 %v3087_v3  ;;  %v3111_v47 = vld [vmem:[%s3820_s1 + $0xc8] sm:$0xff]   ;;  %v3112_v48 = vld [vmem:[%s3820_s1 + $0xd0] sm:$0xff]   ;;  %v3113_v49 = vld [vmem:[%s3820_s1 + $0xd8] sm:$0xff]   ;;  %s278_s11 = scalar_lea.vmem %s3826_s7, %s2590_s8 }
  0x10   : > { %s273_s10 = scalar_lea.vmem %s3819_s0, %s3067_s30  ;;  %2723 = vmatprep.subr.bf16.mxu0 %v3202_v1  ;;  %v3114_v50 = vld [vmem:[%s3820_s1 + $0xe0] sm:$0xff]   ;;  %v3115_v51 = vld [vmem:[%s3820_s1 + $0xe8] sm:$0xff]   ;;  %v3116_v52 = vld [vmem:[%s3820_s1 + $0xf0] sm:$0xff]  }
  0x11   : > { %v3082_v4 = vld [vmem:[%s273_s10] sm:$0xff]   ;;  %v3084_v9 = vld [vmem:[%s273_s10 + $0x8] ss:$0 sps:$4 sm:$0x11]   ;;  %v3117_v53 = vld [vmem:[%s3820_s1 + $0xf8] sm:$0xff]  }
  0x12   : > { %v524_v5 = vld [vmem:[%s273_s10] sm:$0xf]  ;;  %v525_v6 = vld [vmem:[%s273_s10 + $0x4] sm:$0xf]  ;;  %304 = vrot.lane.b32.xlu0 %v3082_v4, %s3204_s15  ;;  %v553_v14 = vshll.u32 %v3084_v9, 16  ;;  %v804_v15 = vrot.slane %v3084_v9, 1 }
  0x13   : > { %v2311_v8 = vcombine.low %v524_v5, %v525_v6  ;;  %v789_v10 = vld [vmem:[%s273_s10] sm:$0xe]  ;;  %2724 = vmatpush3.bf16.msra.mxu0 %v3088_v7  ;;  %v3119_v56 = vld [vmem:[%s3820_s1 + $0x108] sm:$0xff]   ;;  %v3120_v57 = vld [vmem:[%s3820_s1 + $0x110] sm:$0xff]  }
  0x14   : > { %v2352_v11 = vcombine.low %v789_v10, %v525_v6  ;;  %v555_v18 = vrot.slane %v553_v14, 1  ;;  %2729 = vmatprep.subr.bf16.mxu0 %v3202_v1  ;;  %v3118_v55 = vld [vmem:[%s3820_s1 + $0x100] sm:$0xff]   ;;  %v3121_v58 = vld [vmem:[%s3820_s1 + $0x118] sm:$0xff]   ;;  %v3123_v14 = vld [vmem:[%s3823_s4 + $0x88] sm:$0xff]  }
  0x15   : > { %v546_v12 = vshrl.u32 %v2311_v8, 16  ;;  %v548_v13 = vshll.u32 %v2311_v8, 16  ;;  %v2384_v60 = vld [vmem:[%s3821_s2] ss:$0 sm:$0xff] }
  0x16   : > { %v803_v16 = vrot.slane %v2352_v11, 1  ;;  %452 = vrot.lane.b32.xlu0 %v3082_v4, %s3205_s16  ;;  %v2385_v62 = vld [vmem:[%s3822_s3] ss:$0 sm:$0xff] }
  0x17   : > { %v550_v17 = vrot.slane %v548_v13, 1  ;;  %v3126_v13 = vld [vmem:[%s3823_s4 + $0x40] sm:$0xff]  }
  0x18   : > { %v3288_v19 = vsel %vm802_vm1, %v803_v16, %v804_v15  ;;  %v3128_v15 = vld [vmem:[%s3823_s4 + $0x48] sm:$0xff]   ;;  %v3124_v16 = vld [vmem:[%s3823_s4 + $0x90] sm:$0xff]  }
  0x19   : > { %v551_v20 = vor.u32 %v550_v17, %v546_v12  ;;  %v3122_v12 = vld [vmem:[%s3823_s4 + $0x80] sm:$0xff]   ;;  %v3130_v17 = vld [vmem:[%s3823_s4 + $0x50] sm:$0xff]  }
  0x1a   : > { %885 = vrot.lane.b32.xlu0 %v3288_v19, %s3204_s15  ;;  %2866 = vmatpush3.bf16.msra.mxu1 %v3122_v12 }
  0x1b   : > { %v556_v21 = vsel %vm544_vm2, %v551_v20, %v555_v18  ;;  %2867 = vmatprep.subr.bf16.mxu1 %v3202_v1  ;;  %v3125_v18 = vld [vmem:[%s3823_s4 + $0x98] sm:$0xff]   ;;  %v3127_v20 = vld [vmem:[%s3823_s4 + $0xa0] sm:$0xff]  }
  0x1c   : > { %636 = vrot.lane.b32.xlu1 %v556_v21, %s3204_s15 }
  0x1e   : > { %2868 = vmatpush3.bf16.msra.mxu1 %v3123_v14  ;;  %v3137_v14 = vld [vmem:[%s3823_s4 + $0xc8] sm:$0xff]  }
  0x1f   : > { %2869 = vmatprep.subr.bf16.mxu1 %v3202_v1 }
  0x20   : > { %717 = vrot.lane.b32.xlu1 %v556_v21, %s3205_s16 }
  0x22   : > { %2870 = vmatpush3.bf16.msra.mxu1 %v3124_v16 }
  0x23   : > { %2871 = vmatprep.subr.bf16.mxu1 %v3202_v1 }
  0x24   : > { %966 = vrot.lane.b32.xlu1 %v3288_v19, %s3205_s16 }
  0x26   : > { %2872 = vmatpush3.bf16.msra.mxu1 %v3125_v18 }
  0x27   : > { %2873 = vmatprep.subr.bf16.mxu1 %v3202_v1 }
  0x2a   : > { %2874 = vmatpush3.bf16.msra.mxu1 %v3127_v20  ;;  %v3141_v20 = vld [vmem:[%s3823_s4 + $0xd8] sm:$0xff]  }
  0x2b   : > { %2875 = vmatprep.subr.bf16.mxu1 %v3202_v1 }
  0x84   : > { %v305_v23 = vpop.permute.xlu0 %304 }
  0x85   : > { %2726 = vmatmul.mubr.msk.bf16.vlgmr.msra.gmra.mrb[0].mxu0 %vm330_vm3, %v305_v23  ;;  %v3133_v23 = vld [vmem:[%s3823_s4 + $0xb8] sm:$0xff]  }
  0x86   : > { %2730 = vmatpush3.bf16.msra.mxu0 %v3090_v22  ;;  %2737 = vmatprep.mubr.msk.bf16.mxu0 %vm3203_vm0, %v3202_v1  ;;  %v3131_v22 = vld [vmem:[%s3823_s4 + $0xb0] sm:$0xff]  }
  0x87   : > { %2731 = vmatprep.subr.bf16.mxu0 %v3202_v1 }
  0x88   : > { %v453_v31 = vpop.permute.xlu0 %452 }
  0x8a   : > { %2732 = vmatpush3.bf16.msra.mxu0 %v3091_v24 }
  0x8b   : > { %2733 = vmatprep.subr.bf16.mxu0 %v3202_v1 }
  0x8c   : > { %v886_v54 = vpop.permute.xlu0 %885 }
  0x8e   : > { %2734 = vmatpush3.bf16.msra.mxu0 %v3092_v25  ;;  %v637_v40 = vpop.permute.xlu1 %636  ;;  %v3134_v25 = vld [vmem:[%s3823_s4 + $0x60] sm:$0xff]  }
  0x8f   : > { %2735 = vmatprep.subr.bf16.mxu0 %v3202_v1 }
  0x92   : > { %2736 = vmatpush3.bf16.msra.mxu0 %v3093_v26  ;;  %v718_v45 = vpop.permute.xlu1 %717 }
  0x93   : > { %2741 = vmatprep.subr.bf16.mxu0 %v3202_v1 }
  0x95   : > { %2738 = vmatmul.mubr.msk.bf16.vlgmr.msra.gmra.mrb[0].mxu0 %vm330_vm3, %v3082_v4 }
  0x96   : > { %2742 = vmatpush3.bf16.msra.mxu0 %v3094_v27  ;;  %2749 = vmatprep.mubr.msk.bf16.mxu0 %vm3203_vm0, %v3202_v1  ;;  %v967_v59 = vpop.permute.xlu1 %966  ;;  %v3136_v27 = vld [vmem:[%s3823_s4 + $0x68] sm:$0xff]  }
  0x97   : > { %2743 = vmatprep.subr.bf16.mxu0 %v3202_v1 }
  0x9a   : > { %2744 = vmatpush3.bf16.msra.mxu0 %v3095_v28 }
  0x9b   : > { %2745 = vmatprep.subr.bf16.mxu0 %v3202_v1 }
  0x9e   : > { %2746 = vmatpush3.bf16.msra.mxu0 %v3096_v29 }
  0x9f   : > { %2747 = vmatprep.subr.bf16.mxu0 %v3202_v1 }
  0xa2   : > { %2748 = vmatpush3.bf16.msra.mxu0 %v3097_v30 }
  0xa3   : > { %2753 = vmatprep.subr.bf16.mxu0 %v3202_v1 }
  0xa5   : > { %2750 = vmatmul.mubr.msk.bf16.vlgmr.msra.gmra.mrb[0].mxu0 %vm330_vm3, %v453_v31 }
  0xa6   : > { %2754 = vmatpush3.bf16.msra.mxu0 %v3098_v32  ;;  %2761 = vmatprep.mubr.msk.bf16.mxu0 %vm3203_vm0, %v3202_v1  ;;  %v3138_v32 = vld [vmem:[%s3823_s4 + $0x70] sm:$0xff]  }
  0xa7   : > { %2755 = vmatprep.subr.bf16.mxu0 %v3202_v1 }
  0xaa   : > { %2756 = vmatpush3.bf16.msra.mxu0 %v3099_v33 }
  0xab   : > { %2757 = vmatprep.subr.bf16.mxu0 %v3202_v1 }
  0xae   : > { %2758 = vmatpush3.bf16.msra.mxu0 %v3100_v34 }
  0xaf   : > { %2759 = vmatprep.subr.bf16.mxu0 %v3202_v1 }
  0xb2   : > { %2760 = vmatpush3.bf16.msra.mxu0 %v3101_v35 }
  0xb3   : > { %2765 = vmatprep.subr.bf16.mxu0 %v3202_v1 }
  0xb5   : > { %2762 = vmatmul.mubr.msk.bf16.vlgmr.msra.gmra.mrb[0].mxu0 %vm330_vm3, %v556_v21  ;;  %v3129_v21 = vld [vmem:[%s3823_s4 + $0xa8] sm:$0xff]  }
  0xb6   : > { %2766 = vmatpush3.bf16.msra.mxu0 %v3102_v36  ;;  %2773 = vmatprep.mubr.msk.bf16.mxu0 %vm3203_vm0, %v3202_v1 }
  0xb7   : > { %2767 = vmatprep.subr.bf16.mxu0 %v3202_v1  ;;  %2876 = vmatpush3.bf16.msra.mxu1 %v3129_v21 }
  0xb8   : > { %2877 = vmatprep.subr.bf16.mxu1 %v3202_v1 }
  0xba   : > { %2768 = vmatpush3.bf16.msra.mxu0 %v3103_v37 }
  0xbb   : > { %2769 = vmatprep.subr.bf16.mxu0 %v3202_v1  ;;  %2878 = vmatpush3.bf16.msra.mxu1 %v3131_v22  ;;  %v3142_v22 = vld [vmem:[%s3823_s4] sm:$0xff]  }
  0xbc   : > { %2879 = vmatprep.subr.bf16.mxu1 %v3202_v1 }
  0xbe   : > { %2770 = vmatpush3.bf16.msra.mxu0 %v3104_v38 }
  0xbf   : > { %2771 = vmatprep.subr.bf16.mxu0 %v3202_v1  ;;  %2880 = vmatpush3.bf16.msra.mxu1 %v3133_v23 }
  0xc0   : > { %2885 = vmatprep.subr.bf16.mxu1 %v3202_v1 }
  0xc2   : > { %2772 = vmatpush3.bf16.msra.mxu0 %v3105_v39 }
  0xc3   : > { %2777 = vmatprep.subr.bf16.mxu0 %v3202_v1 }
  0xc5   : > { %2774 = vmatmul.mubr.msk.bf16.vlgmr.msra.gmra.mrb[0].mxu0 %vm330_vm3, %v637_v40 }
  0xc6   : > { %2778 = vmatpush3.bf16.msra.mxu0 %v3106_v41  ;;  %2785 = vmatprep.mubr.msk.bf16.mxu0 %vm3203_vm0, %v3202_v1 }
  0xc7   : > { %2779 = vmatprep.subr.bf16.mxu0 %v3202_v1 }
  0xca   : > { %2780 = vmatpush3.bf16.msra.mxu0 %v3107_v42 }
  0xcb   : > { %2781 = vmatprep.subr.bf16.mxu0 %v3202_v1 }
  0xce   : > { %2782 = vmatpush3.bf16.msra.mxu0 %v3108_v43 }
  0xcf   : > { %2783 = vmatprep.subr.bf16.mxu0 %v3202_v1 }
  0xd2   : > { %2784 = vmatpush3.bf16.msra.mxu0 %v3109_v44  ;;  %v3140_v44 = vld [vmem:[%s3823_s4 + $0x78] sm:$0xff]  }
  0xd3   : > { %2789 = vmatprep.subr.bf16.mxu0 %v3202_v1 }
  0xd5   : > { %2786 = vmatmul.mubr.msk.bf16.vlgmr.msra.gmra.mrb[0].mxu0 %vm330_vm3, %v718_v45 }
  0xd6   : > { %2790 = vmatpush3.bf16.msra.mxu0 %v3110_v46  ;;  %2797 = vmatprep.mubr.msk.bf16.mxu0 %vm3203_vm0, %v3202_v1 }
  0xd7   : > { %2791 = vmatprep.subr.bf16.mxu0 %v3202_v1 }
  0xda   : > { %2792 = vmatpush3.bf16.msra.mxu0 %v3111_v47 }
  0xdb   : > { %2793 = vmatprep.subr.bf16.mxu0 %v3202_v1 }
  0xde   : > { %2794 = vmatpush3.bf16.msra.mxu0 %v3112_v48 }
  0xdf   : > { %2795 = vmatprep.subr.bf16.mxu0 %v3202_v1 }
  0xe2   : > { %2796 = vmatpush3.bf16.msra.mxu0 %v3113_v49 }
  0xe3   : > { %2801 = vmatprep.subr.bf16.mxu0 %v3202_v1 }
  0xe5   : > { %2798 = vmatmul.mubr.msk.bf16.vlgmr.msra.gmra.mrb[0].mxu0 %vm330_vm3, %v3288_v19  ;;  %v3132_v19 = vld [vmem:[%s3823_s4 + $0x58] sm:$0xff]  }
  0xe6   : > { %2802 = vmatpush3.bf16.msra.mxu0 %v3114_v50  ;;  %2809 = vmatprep.mubr.msk.bf16.mxu0 %vm3203_vm0, %v3202_v1 }
  0xe7   : > { %2803 = vmatprep.subr.bf16.mxu0 %v3202_v1 }
  0xea   : > { %2804 = vmatpush3.bf16.msra.mxu0 %v3115_v51 }
  0xeb   : > { %2805 = vmatprep.subr.bf16.mxu0 %v3202_v1 }
  0xee   : > { %2806 = vmatpush3.bf16.msra.mxu0 %v3116_v52 }
  0xef   : > { %2807 = vmatprep.subr.bf16.mxu0 %v3202_v1 }
  0xf2   : > { %2808 = vmatpush3.bf16.msra.mxu0 %v3117_v53 }
  0xf3   : > { %2813 = vmatprep.subr.bf16.mxu0 %v3202_v1 }
  0xf5   : > { %2810 = vmatmul.mubr.msk.bf16.vlgmr.msra.gmra.mrb[0].mxu0 %vm330_vm3, %v886_v54 }
  0xf6   : > { %2814 = vmatpush3.bf16.msra.mxu0 %v3118_v55  ;;  %2821 = vmatprep.mubr.msk.bf16.mxu0 %vm3203_vm0, %v3202_v1 }
  0xf7   : > { %2815 = vmatprep.subr.bf16.mxu0 %v3202_v1 }
  0xfa   : > { %2816 = vmatpush3.bf16.msra.mxu0 %v3119_v56 }
  0xfb   : > { %2817 = vmatprep.subr.bf16.mxu0 %v3202_v1 }
  0xfe   : > { %2818 = vmatpush3.bf16.msra.mxu0 %v3120_v57 }
  0xff   : > { %2819 = vmatprep.subr.bf16.mxu0 %v3202_v1 }
 0x102   : > { %2820 = vmatpush3.bf16.msra.mxu0 %v3121_v58 }
 0x103   : > { %2825 = vmatprep.subr.bf16.mxu0 %v3202_v1 }
 0x105   : > { %2822 = vmatmul.mubr.msk.bf16.vlgmr.msra.gmra.mrb[0].mxu0 %vm330_vm3, %v967_v59 }
 0x106   : > { %2841 = vmatprep.mubr.msk.bf16.mxu0 %vm3203_vm0, %v3202_v1  ;;  %2826 = vmatpush3.bf16.msra.mxu0 %v3126_v13 }
 0x107   : > { %2827 = vmatprep.subr.bf16.mxu0 %v3202_v1 }
 0x10a   : > { %2828 = vmatpush3.bf16.msra.mxu0 %v3128_v15 }
 0x10b   : > { %2829 = vmatprep.subr.bf16.mxu0 %v3202_v1 }
 0x10e   : > { %2830 = vmatpush3.bf16.msra.mxu0 %v3130_v17  ;;  %v3139_v17 = vld [vmem:[%s3823_s4 + $0xd0] sm:$0xff]  }
 0x10f   : > { %2831 = vmatprep.subr.bf16.mxu0 %v3202_v1 }
 0x112   : > { %2832 = vmatpush3.bf16.msra.mxu0 %v3132_v19 }
 0x113   : > { %2833 = vmatprep.subr.bf16.mxu0 %v3202_v1 }
 0x116   : > { %2834 = vmatpush3.bf16.msra.mxu0 %v3134_v25  ;;  %v3143_v25 = vld [vmem:[%s3823_s4 + $0xe0] sm:$0xff]  }
 0x117   : > { %2835 = vmatprep.subr.bf16.mxu0 %v3202_v1 }
 0x11a   : > { %2836 = vmatpush3.bf16.msra.mxu0 %v3136_v27 }
 0x11b   : > { %2837 = vmatprep.subr.bf16.mxu0 %v3202_v1 }
 0x11e   : > { %2838 = vmatpush3.bf16.msra.mxu0 %v3138_v32 }
 0x11f   : > { %2839 = vmatprep.subr.bf16.mxu0 %v3202_v1 }
 0x122   : > { %2840 = vmatpush3.bf16.msra.mxu0 %v3140_v44 }
 0x123   : > { %2845 = vmatprep.subr.bf16.mxu0 %v3202_v1 }
 0x1d8   : > { %v1029_v61 = vpop.f32.mrb[0].mxu0 }
 0x1d9   : > { %v1045_v63 = vmul.f32 %v2384_v60, %v1029_v61  ;;  %v2823_v0 = vpop.f32.mrb[1].mxu0 }
 0x1da   : > { %v1032_v2 = vpop.f32.mrb[2].mxu0 }
 0x1db   : > { %v1054_v3 = vadd.f32 %v2385_v62, %v1045_v63  ;;  %v1046_v4 = vmul.f32 %v2384_v60, %v1032_v2  ;;  %v2824_v5 = vpop.f32.mrb[3].mxu0 }
 0x1dd   : > { %v1056_v6 = vmax.f32 %v1054_v3, 0.0  ;;  %v1055_v7 = vadd.f32 %v2385_v62, %v1046_v4 }
 0x1df   : > { %v1069_v8 = vrot.slane %v1056_v6, 7  ;;  %v1057_v9 = vmax.f32 %v1055_v7, 0.0 }
 0x1e1   : > { %v1070_v10 = vrot.slane %v1057_v9, 7  ;;  %1072 = vrot.lane.b32.xlu0 %v1069_v8, %s3206_s27 }
 0x1e3   : > { %v1071_v11 = vsel %vm1068_vm6, %v1069_v8, %v1070_v10 }
 0x1e4   : > { %1074 = vrot.lane.b32.xlu1 %v1071_v11, %s3206_s27 }
 0x1e5   : > { %1076 = vrot.lane.b32.xlu0 %v1070_v10, %s3206_s27  ;;  %v3135_v10 = vld [vmem:[%s3823_s4 + $0xc0] sm:$0xff]  }
 0x253   : > { %v1073_v24 = vpop.permute.xlu0 %1072 }
 0x254   : > { %1082 = vst.msk [vmem:[#allocation2] sm:$0xfe] %vm1081_vm7, %v1073_v24 }
 0x255   : > { %1084 = vst.msk [vmem:[#allocation2 + $0x8] sm:$0xfe] %vm1083_vm8, %v1073_v24 }
 0x256   : > { %v1075_v26 = vpop.permute.xlu1 %1074 }
 0x257   : > { %1086 = vst.msk [vmem:[#allocation2 + $0x10] sm:$0xff] %vm1085_vm9, %v1075_v26  ;;  %v1077_v28 = vpop.permute.xlu0 %1076 }
 0x258   : > { %1088 = vst.msk [vmem:[#allocation2 + $0x18] sm:$0xff] %vm1087_vm10, %v1075_v26 }
 0x259   : > { %1090 = vst.msk [vmem:[#allocation2 + $0x20] sm:$0x1] %vm1089_vm11, %v1077_v28 }
 0x25a   : > { %1092 = vst.msk [vmem:[#allocation2 + $0x28] sm:$0x1] %vm1091_vm12, %v1077_v28 }
 0x25b   : > { %v1093_v30 = vld [vmem:[#allocation2] sm:$0xff] }
 0x25c   : > { %v1112_v29 = vld [vmem:[#allocation2 + $0x8] sm:$0xff]  ;;  %v1560_v35 = vld [vmem:[#allocation2] sm:$0xfe] }
 0x25d   : > { %v1561_v31 = vld [vmem:[#allocation2 + $0x8] sm:$0xfe]  ;;  %v1940_v62 = vld [vmem:[#allocation2] sm:$0xfc] }
 0x25e   : > { %v3520_v34 = vld [vmem:[#allocation2 + $0x10] sm:$0xff]  ;;  %v1941_v61 = vld [vmem:[#allocation2 + $0x8] sm:$0xfc]  ;;  %v1434_v27 = vld [vmem:[#allocation2] sm:$0xfe] }
 0x25f   : > { %v1113_v33 = vld [vmem:[#allocation2 + $0x18] sm:$0xff]  ;;  %v3523_v37 = vpack.c.bf16 %v3520_v34, %v1093_v30  ;;  %v1566_v41 = vpack.c.bf16 %v3520_v34, %v1560_v35  ;;  %v1944_v2 = vpack.c.bf16 %v3520_v34, %v1940_v62  ;;  %v1437_v28 = vpack.c.bf16 %v3520_v34, %v1434_v27  ;;  %v3146_v35 = vld [vmem:[%s3823_s4 + $0x10] sm:$0xff]   ;;  %v3166_v62 = vld [vmem:[%s3823_s4 + $0x160] sm:$0xff]  }
 0x260   : > { %v1114_v36 = vpack.c.bf16 %v1113_v33, %v1112_v29  ;;  %v1567_v39 = vpack.c.bf16 %v1113_v33, %v1561_v31  ;;  %v1564_v40 = vld [vmem:[#allocation2 + $0x20] sm:$0x1]  ;;  %v1945_v63 = vpack.c.bf16 %v1113_v33, %v1941_v61  ;;  %v3144_v29 = vld [vmem:[%s3823_s4 + $0x8] sm:$0xff]   ;;  %v3165_v61 = vld [vmem:[%s3823_s4 + $0x158] sm:$0xff]  }
 0x261   : > { %v1565_v38 = vld [vmem:[#allocation2 + $0x28] sm:$0x1]  ;;  %v1568_v43 = vpack.c.bf16 %v1564_v40, %v1564_v40  ;;  %1336 = vrot.lane.b32.xlu1 %v3523_v37, %s3207_s18  ;;  %v1590_v46 = vshll.u32 %v1566_v41, 16  ;;  %v1588_v51 = vshrl.u32 %v1566_v41, 16  ;;  %v1942_v60 = vld [vmem:[#allocation2 + $0x20] sm:$0x3] }
 0x262   : > { %v1569_v42 = vpack.c.bf16 %v1565_v38, %v1565_v38  ;;  %1338 = vrot.lane.b32.xlu0 %v1114_v36, %s3207_s18  ;;  %v1602_v45 = vshll.u32 %v1567_v39, 16  ;;  %v1600_v49 = vshrl.u32 %v1567_v39, 16  ;;  %v1943_v59 = vld [vmem:[#allocation2 + $0x28] sm:$0x3]  ;;  %v1946_v3 = vpack.c.bf16 %v1942_v60, %v1942_v60  ;;  %v1436_v30 = vld [vmem:[#allocation2 + $0x20] sm:$0x1] }
 0x263   : > { %v1595_v48 = vshll.u32 %v1568_v43, 16  ;;  %v1592_v52 = vrot.slane %v1590_v46, 1  ;;  %v1947_v0 = vpack.c.bf16 %v1943_v59, %v1943_v59  ;;  %v1972_v4 = vrot.slane %v1945_v63, 1  ;;  %v3145_v31 = vld [vmem:[%s3823_s4 + $0xe8] sm:$0xff]   ;;  %v3148_v40 = vld [vmem:[%s3823_s4 + $0x18] sm:$0xff]   ;;  %v3151_v46 = vld [vmem:[%s3823_s4 + $0x100] sm:$0xff]  }
 0x264   : > { %v1607_v47 = vshll.u32 %v1569_v42, 16  ;;  %v1604_v50 = vrot.slane %v1602_v45, 1  ;;  %v1969_v6 = vrot.slane %v1944_v2, 1  ;;  %v1970_v7 = vrot.slane %v1946_v3, 1  ;;  %v3149_v41 = vld [vmem:[%s3823_s4 + $0xf8] sm:$0xff]   ;;  %v3150_v45 = vld [vmem:[%s3823_s4 + $0x20] sm:$0xff]  }
 0x265   : > { %v1597_v54 = vrot.slane %v1595_v48, 1  ;;  %v1593_v56 = vor.u32 %v1592_v52, %v1588_v51  ;;  %v1973_v5 = vrot.slane %v1947_v0, 1  ;;  %v1438_v32 = vpack.c.bf16 %v1436_v30, %v1436_v30  ;;  %v3152_v48 = vld [vmem:[%s3823_s4 + $0x28] sm:$0xff]   ;;  %v3155_v51 = vld [vmem:[%s3823_s4 + $0x110] sm:$0xff]   ;;  %v3156_v52 = vld [vmem:[%s3823_s4 + $0x38] sm:$0xff]  }
 0x266   : > { %v1609_v53 = vrot.slane %v1607_v47, 1  ;;  %v1605_v55 = vor.u32 %v1604_v50, %v1600_v49  ;;  %v1971_v9 = vsel %vm802_vm1, %v1969_v6, %v1970_v7  ;;  %v1459_v33 = vshll.u32 %v1437_v28, 16  ;;  %v3153_v49 = vld [vmem:[%s3823_s4 + $0x108] sm:$0xff]   ;;  %v3154_v50 = vld [vmem:[%s3823_s4 + $0x30] sm:$0xff]   ;;  %v3169_v2 = vld [vmem:[%s3823_s4 + $0x178] sm:$0xff]  }
 0x267   : > { %v1598_v58 = vsel %vm544_vm2, %v1593_v56, %v1597_v54  ;;  %v1974_v8 = vsel %vm802_vm1, %v1972_v4, %v1973_v5  ;;  %v1464_v39 = vshll.u32 %v1438_v32, 16  ;;  %v1457_v42 = vshrl.u32 %v1437_v28, 16  ;;  %v3158_v54 = vld [vmem:[%s3823_s4 + $0x120] sm:$0xff]   ;;  %v3160_v56 = vld [vmem:[%s3823_s4 + $0x130] sm:$0xff]   ;;  %v3163_v59 = vld [vmem:[%s3823_s4 + $0x148] sm:$0xff]  }
 0x268   : > { %v1610_v57 = vsel %vm544_vm2, %v1605_v55, %v1609_v53  ;;  %1611 = vrot.lane.b32.xlu1 %v1598_v58, %s3205_s16  ;;  %v1461_v38 = vrot.slane %v1459_v33, 1  ;;  %v3157_v53 = vld [vmem:[%s3823_s4 + $0x118] sm:$0xff]   ;;  %v3159_v55 = vld [vmem:[%s3823_s4 + $0x128] sm:$0xff]   ;;  %v3164_v60 = vld [vmem:[%s3823_s4 + $0x150] sm:$0xff]  }
 0x269   : > { %1613 = vrot.lane.b32.xlu0 %v1610_v57, %s3205_s16  ;;  %v1466_v44 = vrot.slane %v1464_v39, 1  ;;  %v3167_v63 = vld [vmem:[%s3823_s4 + $0x168] sm:$0xff]   ;;  %v3168_v0 = vld [vmem:[%s3823_s4 + $0x170] sm:$0xff]   ;;  %v3170_v3 = vld [vmem:[%s3823_s4 + $0x180] sm:$0xff]  }
 0x26a   : > { %v1462_v43 = vor.u32 %v1461_v38, %v1457_v42  ;;  %v3171_v4 = vld [vmem:[%s3823_s4 + $0x188] sm:$0xff]   ;;  %v3172_v5 = vld [vmem:[%s3823_s4 + $0x190] sm:$0xff]   ;;  %v3173_v6 = vld [vmem:[%s3823_s4 + $0x198] sm:$0xff]  }
 0x26b   : > { %v3174_v7 = vld [vmem:[%s3823_s4 + $0x1a0] sm:$0xff]   ;;  %v3188_v30 = vld [vmem:[%s3823_s4 + $0x210] sm:$0xff]   ;;  %v3191_v33 = vld [vmem:[%s3823_s4 + $0x228] sm:$0xff]  }
 0x26c   : > { %1725 = vrot.lane.b32.xlu1 %v1598_v58, %s3207_s18  ;;  %v1467_v47 = vsel %vm544_vm2, %v1462_v43, %v1466_v44  ;;  %v3186_v27 = vld [vmem:[%s3823_s4 + $0x200] sm:$0xff]  }
 0x26d   : > { %1727 = vrot.lane.b32.xlu0 %v1610_v57, %s3207_s18  ;;  %v3161_v57 = vld [vmem:[%s3823_s4 + $0x138] sm:$0xff]   ;;  %v3190_v32 = vld [vmem:[%s3823_s4 + $0x220] sm:$0xff]  }
 0x270   : > { %1134 = vrot.lane.b32.xlu1 %v3523_v37, %s3205_s16 }
 0x271   : > { %1136 = vrot.lane.b32.xlu0 %v1114_v36, %s3205_s16  ;;  %v3147_v36 = vld [vmem:[%s3823_s4 + $0xf0] sm:$0xff]  }
 0x274   : > { %1975 = vrot.lane.b32.xlu1 %v1971_v9, %s3205_s16 }
 0x275   : > { %1977 = vrot.lane.b32.xlu0 %v1974_v8, %s3205_s16 }
 0x278   : > { %2089 = vrot.lane.b32.xlu1 %v1971_v9, %s3207_s18  ;;  %v1823_v9 = vld [vmem:[#allocation2 + $0x20] sm:$0x3] }
 0x279   : > { %2091 = vrot.lane.b32.xlu0 %v1974_v8, %s3207_s18  ;;  %v3175_v8 = vld [vmem:[%s3823_s4 + $0x1a8] sm:$0xff]  }
 0x2d3   : > { %v1337_v12 = vpop.permute.xlu1 %1336 }
 0x2d4   : > { %v1339_v11 = vpop.permute.xlu0 %1338 }
 0x2d5   : > { %v1341_v13 = vsel %vm1340_vm13, %v1337_v12, %v1339_v11  ;;  %v1822_v11 = vld [vmem:[#allocation2] sm:$0xfc] }
 0x2d6   : > { %2882 = vmatmul.mubr.bf16.vlgmr.msra.gmra.mrb[0].mxu1 %v1341_v13  ;;  %v1824_v12 = vpack.c.bf16 %v3520_v34, %v1822_v11  ;;  %v1825_v13 = vpack.c.bf16 %v1823_v9, %v1823_v9  ;;  %v3179_v34 = vld [vmem:[%s3823_s4 + $0x1c8] sm:$0xff]  }
 0x2d7   : > { %2886 = vmatpush3.bf16.msra.mxu1 %v3135_v10  ;;  %2901 = vmatprep.mubr.msk.bf16.mxu1 %vm3203_vm0, %v3202_v1  ;;  %v3176_v10 = vld [vmem:[%s3823_s4 + $0x1b0] sm:$0xff]  }
 0x2d8   : > { %2887 = vmatprep.subr.bf16.mxu1 %v3202_v1 }
 0x2da   : > { %v3562_v16 = vpop.permute.xlu1 %1611 }
 0x2db   : > { %2888 = vmatpush3.bf16.msra.mxu1 %v3137_v14  ;;  %v3560_v15 = vpop.permute.xlu0 %1613  ;;  %v3177_v14 = vld [vmem:[%s3823_s4 + $0x1b8] sm:$0xff]  }
 0x2dc   : > { %2889 = vmatprep.subr.bf16.mxu1 %v3202_v1  ;;  %v1615_v58 = vsel %vm1138_vm14, %v3562_v16, %v3560_v15  ;;  %v1845_v15 = vrot.slane %v1824_v12, 1  ;;  %v1846_v16 = vrot.slane %v1825_v13, 1 }
 0x2de   : > { %v1726_v19 = vpop.permute.xlu1 %1725 }
 0x2df   : > { %2890 = vmatpush3.bf16.msra.mxu1 %v3139_v17  ;;  %v1728_v18 = vpop.permute.xlu0 %1727  ;;  %v3178_v17 = vld [vmem:[%s3823_s4 + $0x1c0] sm:$0xff]  }
 0x2e0   : > { %v3572_v21 = vsel %vm1340_vm13, %v1726_v19, %v1728_v18  ;;  %2891 = vmatprep.subr.bf16.mxu1 %v3202_v1  ;;  %v1847_v18 = vsel %vm802_vm1, %v1845_v15, %v1846_v16  ;;  %v3180_v19 = vld [vmem:[%s3823_s4 + $0x1d0] sm:$0xff]  }
 0x2e2   : > { %v1135_v24 = vpop.permute.xlu1 %1134 }
 0x2e3   : > { %2892 = vmatpush3.bf16.msra.mxu1 %v3141_v20  ;;  %v1137_v23 = vpop.permute.xlu0 %1136  ;;  %v3181_v20 = vld [vmem:[%s3823_s4 + $0x1d8] sm:$0xff]  }
 0x2e4   : > { %v1139_v26 = vsel %vm1138_vm14, %v1135_v24, %v1137_v23  ;;  %2893 = vmatprep.subr.bf16.mxu1 %v3202_v1  ;;  %v3184_v23 = vld [vmem:[%s3823_s4 + $0x1f0] sm:$0xff]   ;;  %v3185_v24 = vld [vmem:[%s3823_s4 + $0x1f8] sm:$0xff]  }
 0x2e5   : > { %2842 = vmatmul.mubr.bf16.vlgmr.msra.gmra.mrb[4].mxu0 %v1139_v26 }
 0x2e6   : > { %2846 = vmatpush3.bf16.msra.mxu0 %v3142_v22  ;;  %2861 = vmatprep.mubr.msk.bf16.mxu0 %vm3203_vm0, %v3202_v1  ;;  %v3183_v22 = vld [vmem:[%s3823_s4 + $0x1e8] sm:$0xff]   ;;  %v1976_v26 = vpop.permute.xlu1 %1975 }
 0x2e7   : > { %2894 = vmatpush3.bf16.msra.mxu1 %v3143_v25  ;;  %2847 = vmatprep.subr.bf16.mxu0 %v3202_v1  ;;  %v1978_v25 = vpop.permute.xlu0 %1977 }
 0x2e8   : > { %2895 = vmatprep.subr.bf16.mxu1 %v3202_v1  ;;  %v1979_v28 = vsel %vm1138_vm14, %v1976_v26, %v1978_v25 }
 0x2ea   : > { %2848 = vmatpush3.bf16.msra.mxu0 %v3144_v29  ;;  %v3187_v29 = vld [vmem:[%s3823_s4 + $0x208] sm:$0xff]   ;;  %v2090_v39 = vpop.permute.xlu1 %2089 }
 0x2eb   : > { %2896 = vmatpush3.bf16.msra.mxu1 %v3145_v31  ;;  %2849 = vmatprep.subr.bf16.mxu0 %v3202_v1  ;;  %v3189_v31 = vld [vmem:[%s3823_s4 + $0x218] sm:$0xff]   ;;  %v2092_v38 = vpop.permute.xlu0 %2091 }
 0x2ec   : > { %2897 = vmatprep.subr.bf16.mxu1 %v3202_v1 }
 0x2ee   : > { %2850 = vmatpush3.bf16.msra.mxu0 %v3146_v35  ;;  %v3192_v35 = vld [vmem:[%s3823_s4 + $0x230] sm:$0xff]  }
 0x2ef   : > { %2898 = vmatpush3.bf16.msra.mxu1 %v3147_v36  ;;  %2851 = vmatprep.subr.bf16.mxu0 %v3202_v1  ;;  %v3193_v36 = vld [vmem:[%s3823_s4 + $0x238] sm:$0xff]  }
 0x2f0   : > { %2899 = vmatprep.subr.bf16.mxu1 %v3202_v1 }
 0x2f2   : > { %2852 = vmatpush3.bf16.msra.mxu0 %v3148_v40  ;;  %v2093_v40 = vsel %vm1340_vm13, %v2090_v39, %v2092_v38 }
 0x2f3   : > { %2900 = vmatpush3.bf16.msra.mxu1 %v3149_v41  ;;  %2853 = vmatprep.subr.bf16.mxu0 %v3202_v1 }
 0x2f4   : > { %2905 = vmatprep.subr.bf16.mxu1 %v3202_v1 }
 0x2f6   : > { %2854 = vmatpush3.bf16.msra.mxu0 %v3150_v45  ;;  %2902 = vmatmul.mubr.bf16.vlgmr.msra.gmra.mrb[0].mxu1 %v1467_v47 }
 0x2f7   : > { %2906 = vmatpush3.bf16.msra.mxu1 %v3151_v46  ;;  %2855 = vmatprep.subr.bf16.mxu0 %v3202_v1  ;;  %v2586_v46 = vld [vmem:[%s3824_s5] ss:$0 sm:$0xff] }
 0x2f8   : > { %2907 = vmatprep.subr.bf16.mxu1 %v3202_v1  ;;  %2921 = vmatprep.mubr.msk.bf16.mxu1 %vm3203_vm0, %v3202_v1 }
 0x2fa   : > { %2856 = vmatpush3.bf16.msra.mxu0 %v3152_v48 }
 0x2fb   : > { %2908 = vmatpush3.bf16.msra.mxu1 %v3153_v49  ;;  %2857 = vmatprep.subr.bf16.mxu0 %v3202_v1 }
 0x2fc   : > { %2909 = vmatprep.subr.bf16.mxu1 %v3202_v1 }
 0x2fe   : > { %2858 = vmatpush3.bf16.msra.mxu0 %v3154_v50 }
 0x2ff   : > { %2910 = vmatpush3.bf16.msra.mxu1 %v3155_v51  ;;  %2859 = vmatprep.subr.bf16.mxu0 %v3202_v1 }
 0x300   : > { %2911 = vmatprep.subr.bf16.mxu1 %v3202_v1 }
 0x302   : > { %2860 = vmatpush3.bf16.msra.mxu0 %v3156_v52 }
 0x303   : > { %2912 = vmatpush3.bf16.msra.mxu1 %v3157_v53 }
 0x304   : > { %2913 = vmatprep.subr.bf16.mxu1 %v3202_v1 }
 0x305   : > { %2862 = vmatmul.mubr.bf16.vlgmr.msra.gmra.mrb[4].mxu0 %v3523_v37  ;;  %v3162_v37 = vld [vmem:[%s3823_s4 + $0x140] sm:$0xff]  }
 0x307   : > { %2914 = vmatpush3.bf16.msra.mxu1 %v3158_v54 }
 0x308   : > { %2915 = vmatprep.subr.bf16.mxu1 %v3202_v1 }
 0x30b   : > { %2916 = vmatpush3.bf16.msra.mxu1 %v3159_v55 }
 0x30c   : > { %2917 = vmatprep.subr.bf16.mxu1 %v3202_v1 }
 0x30f   : > { %2918 = vmatpush3.bf16.msra.mxu1 %v3160_v56 }
 0x310   : > { %2919 = vmatprep.subr.bf16.mxu1 %v3202_v1 }
 0x313   : > { %2920 = vmatpush3.bf16.msra.mxu1 %v3161_v57 }
 0x314   : > { %2925 = vmatprep.subr.bf16.mxu1 %v3202_v1 }
 0x316   : > { %2922 = vmatmul.mubr.bf16.vlgmr.msra.gmra.mrb[0].mxu1 %v1615_v58 }
 0x317   : > { %2926 = vmatpush3.bf16.msra.mxu1 %v3162_v37  ;;  %2941 = vmatprep.mubr.msk.bf16.mxu1 %vm3203_vm0, %v3202_v1 }
 0x318   : > { %2927 = vmatprep.subr.bf16.mxu1 %v3202_v1 }
 0x31b   : > { %2928 = vmatpush3.bf16.msra.mxu1 %v3163_v59 }
 0x31c   : > { %2929 = vmatprep.subr.bf16.mxu1 %v3202_v1 }
 0x31f   : > { %2930 = vmatpush3.bf16.msra.mxu1 %v3164_v60 }
 0x320   : > { %2931 = vmatprep.subr.bf16.mxu1 %v3202_v1 }
 0x323   : > { %2932 = vmatpush3.bf16.msra.mxu1 %v3165_v61 }
 0x324   : > { %2933 = vmatprep.subr.bf16.mxu1 %v3202_v1 }
 0x327   : > { %2934 = vmatpush3.bf16.msra.mxu1 %v3166_v62 }
 0x328   : > { %2935 = vmatprep.subr.bf16.mxu1 %v3202_v1 }
 0x32b   : > { %2936 = vmatpush3.bf16.msra.mxu1 %v3167_v63 }
 0x32c   : > { %2937 = vmatprep.subr.bf16.mxu1 %v3202_v1 }
 0x32f   : > { %2938 = vmatpush3.bf16.msra.mxu1 %v3168_v0 }
 0x330   : > { %2939 = vmatprep.subr.bf16.mxu1 %v3202_v1 }
 0x333   : > { %2940 = vmatpush3.bf16.msra.mxu1 %v3169_v2 }
 0x334   : > { %2945 = vmatprep.subr.bf16.mxu1 %v3202_v1 }
 0x336   : > { %2942 = vmatmul.mubr.bf16.vlgmr.msra.gmra.mrb[0].mxu1 %v3572_v21  ;;  %v3182_v21 = vld [vmem:[%s3823_s4 + $0x1e0] sm:$0xff]  }
 0x337   : > { %2946 = vmatpush3.bf16.msra.mxu1 %v3170_v3  ;;  %2961 = vmatprep.mubr.msk.bf16.mxu1 %vm3203_vm0, %v3202_v1 }
 0x338   : > { %2947 = vmatprep.subr.bf16.mxu1 %v3202_v1 }
 0x33b   : > { %2948 = vmatpush3.bf16.msra.mxu1 %v3171_v4 }
 0x33c   : > { %2949 = vmatprep.subr.bf16.mxu1 %v3202_v1 }
 0x33f   : > { %2950 = vmatpush3.bf16.msra.mxu1 %v3172_v5 }
 0x340   : > { %2951 = vmatprep.subr.bf16.mxu1 %v3202_v1 }
 0x343   : > { %2952 = vmatpush3.bf16.msra.mxu1 %v3173_v6 }
 0x344   : > { %2953 = vmatprep.subr.bf16.mxu1 %v3202_v1 }
 0x347   : > { %2954 = vmatpush3.bf16.msra.mxu1 %v3174_v7 }
 0x348   : > { %2955 = vmatprep.subr.bf16.mxu1 %v3202_v1 }
 0x34b   : > { %2956 = vmatpush3.bf16.msra.mxu1 %v3175_v8 }
 0x34c   : > { %2957 = vmatprep.subr.bf16.mxu1 %v3202_v1 }
 0x34f   : > { %2958 = vmatpush3.bf16.msra.mxu1 %v3176_v10 }
 0x350   : > { %2959 = vmatprep.subr.bf16.mxu1 %v3202_v1 }
 0x353   : > { %2960 = vmatpush3.bf16.msra.mxu1 %v3177_v14 }
 0x354   : > { %2965 = vmatprep.subr.bf16.mxu1 %v3202_v1 }
 0x356   : > { %2962 = vmatmul.mubr.bf16.vlgmr.msra.gmra.mrb[0].mxu1 %v1847_v18 }
 0x357   : > { %2966 = vmatpush3.bf16.msra.mxu1 %v3178_v17  ;;  %2981 = vmatprep.mubr.msk.bf16.mxu1 %vm3203_vm0, %v3202_v1 }
 0x358   : > { %2967 = vmatprep.subr.bf16.mxu1 %v3202_v1 }
 0x35b   : > { %2968 = vmatpush3.bf16.msra.mxu1 %v3179_v34 }
 0x35c   : > { %2969 = vmatprep.subr.bf16.mxu1 %v3202_v1 }
 0x35f   : > { %2970 = vmatpush3.bf16.msra.mxu1 %v3180_v19 }
 0x360   : > { %2971 = vmatprep.subr.bf16.mxu1 %v3202_v1 }
 0x363   : > { %2972 = vmatpush3.bf16.msra.mxu1 %v3181_v20 }
 0x364   : > { %2973 = vmatprep.subr.bf16.mxu1 %v3202_v1 }
 0x367   : > { %2974 = vmatpush3.bf16.msra.mxu1 %v3182_v21 }
 0x368   : > { %2975 = vmatprep.subr.bf16.mxu1 %v3202_v1 }
 0x36b   : > { %2976 = vmatpush3.bf16.msra.mxu1 %v3183_v22 }
 0x36c   : > { %2977 = vmatprep.subr.bf16.mxu1 %v3202_v1 }
 0x36f   : > { %2978 = vmatpush3.bf16.msra.mxu1 %v3184_v23 }
 0x370   : > { %2979 = vmatprep.subr.bf16.mxu1 %v3202_v1 }
 0x373   : > { %2980 = vmatpush3.bf16.msra.mxu1 %v3185_v24 }
 0x374   : > { %2985 = vmatprep.subr.bf16.mxu1 %v3202_v1 }
 0x376   : > { %2982 = vmatmul.mubr.bf16.vlgmr.msra.gmra.mrb[0].mxu1 %v1979_v28 }
 0x377   : > { %2986 = vmatpush3.bf16.msra.mxu1 %v3186_v27  ;;  %3001 = vmatprep.mubr.msk.bf16.mxu1 %vm3203_vm0, %v3202_v1 }
 0x378   : > { %2987 = vmatprep.subr.bf16.mxu1 %v3202_v1 }
 0x37b   : > { %2988 = vmatpush3.bf16.msra.mxu1 %v3187_v29 }
 0x37c   : > { %2989 = vmatprep.subr.bf16.mxu1 %v3202_v1 }
 0x37f   : > { %2990 = vmatpush3.bf16.msra.mxu1 %v3188_v30 }
 0x380   : > { %2991 = vmatprep.subr.bf16.mxu1 %v3202_v1 }
 0x383   : > { %2992 = vmatpush3.bf16.msra.mxu1 %v3189_v31 }
 0x384   : > { %2993 = vmatprep.subr.bf16.mxu1 %v3202_v1 }
 0x387   : > { %2994 = vmatpush3.bf16.msra.mxu1 %v3190_v32 }
 0x388   : > { %2995 = vmatprep.subr.bf16.mxu1 %v3202_v1 }
 0x38b   : > { %2996 = vmatpush3.bf16.msra.mxu1 %v3191_v33 }
 0x38c   : > { %2997 = vmatprep.subr.bf16.mxu1 %v3202_v1 }
 0x38f   : > { %2998 = vmatpush3.bf16.msra.mxu1 %v3192_v35 }
 0x390   : > { %2999 = vmatprep.subr.bf16.mxu1 %v3202_v1  ;;  %v2587_v1 = vld [vmem:[%s3825_s6] ss:$0 sm:$0xff] }
 0x393   : > { %3000 = vmatpush3.bf16.msra.mxu1 %v3193_v36 }
 0x396   : > { %3002 = vmatmul.mubr.bf16.vlgmr.msra.gmra.mrb[0].mxu1 %v2093_v40 }
 0x3d8   : > { %v1312_v41 = vpop.f32.mrb[4].mxu0 }
 0x3d9   : > { %v2863_v42 = vpop.f32.mrb[5].mxu0 }
 0x3da   : > { %v1315_v43 = vpop.f32.mrb[6].mxu0 }
 0x3db   : > { %v2864_v44 = vpop.f32.mrb[7].mxu0 }
 0x469   : > { %v2177_v45 = vpop.f32.mrb[0].mxu1 }
 0x46a   : > { %v3005_v47 = vadd.f32 %v2177_v45, %v1312_v41  ;;  %v3003_v48 = vpop.f32.mrb[1].mxu1 }
 0x46b   : > { %v2180_v49 = vpop.f32.mrb[2].mxu1 }
 0x46c   : > { %v2193_v50 = vmul.f32 %v3005_v47, %v2586_v46  ;;  %v3006_v51 = vadd.f32 %v2180_v49, %v1315_v43  ;;  %v3004_v52 = vpop.f32.mrb[3].mxu1 }
 0x46e   : > { %v2202_v53 = vadd.f32 %v2587_v1, %v2193_v50  ;;  %v2194_v54 = vmul.f32 %v3006_v51, %v2586_v46 }
 0x470   : > { %v2204_v55 = vmax.f32 %v2202_v53, 0.0  ;;  %v2203_v56 = vadd.f32 %v2587_v1, %v2194_v54 }
 0x472   : > { %2206 = vst [vmem:[%s278_s11] sm:$0xff] %v2204_v55  ;;  %v2205_v57 = vmax.f32 %v2203_v56, 0.0 }
 0x474   : > { %2207 = vst [vmem:[%s278_s11 + $0x8] sm:$0xff] %v2205_v57 }
 0x475 PF: > { %s17_s24 = sadd.s32 1, %s3200_s24  }
 0x476   : > { %p14_p4 = scmp.ge.s32.totalorder %s17_s24, 4  }
 0x478   :  { %16 = sbr.rel (!%p14_p4) target bundleno = 1 (0x1), region = 94 }

</bundles_post_ra>
